<compile_context>
chip_gen: v7x
topology: tpu7x:2x2x1
jax: 0.10.0
libtpu: 0.0.40
codegen_flags: <defaults>
</compile_context>

<pallas_src>
import numpy as np
import jax
import jax.numpy as jnp
from jax.experimental import pallas as pl
from jax.experimental.pallas import tpu as pltpu


# ----------------------------------------------------------------------------
# Pallas kernel: fused block-complex matmul + bias + complex PReLU
# ----------------------------------------------------------------------------
def _cplx_mm_prelu_kernel(p_ref, w_ref, aux_ref, o_ref):
    # p_ref : (TN, 2K)   [real patches | imag patches]
    # w_ref : (2K, 2Cp)  [[wr, wi], [-wi, wr]]
    # aux   : (2, 2Cp)   row 0 = effective bias, row 1 = per-column PReLU slope
    aux = aux_ref[...]
    out = jnp.dot(p_ref[...], w_ref[...], preferred_element_type=jnp.float32)
    out = out + aux[0:1, :]
    alpha = aux[1:2, :]
    o_ref[...] = jnp.where(out >= 0.0, out, alpha * out)


def _round_up(x, m):
    return ((x + m - 1) // m) * m


def fused_complex_matmul_prelu(p_cat, w_block, aux):
    """p_cat: (N, 2K) f32; w_block: (2K, 2Cp); aux: (2, 2Cp) -> (N, 2Cp)."""
    N, K2 = p_cat.shape
    C2 = w_block.shape[1]
    # One grid step for small layers; two for the big first layer so both
    # TensorCores of a v7x megacore get work.
    num_tiles = 2 if N >= 512 else 1
    tn = _round_up(-(-N // num_tiles), 8)
    n_pad = tn * num_tiles
    p_pad = jnp.pad(p_cat, ((0, n_pad - N), (0, 0)))

    out = pl.pallas_call(
        _cplx_mm_prelu_kernel,
        out_shape=jax.ShapeDtypeStruct((n_pad, C2), jnp.float32),
        grid=(num_tiles,),
        in_specs=[
            pl.BlockSpec((tn, K2), lambda i: (i, 0)),
            pl.BlockSpec((K2, C2), lambda i: (0, 0)),
            pl.BlockSpec((2, C2), lambda i: (0, 0)),
        ],
        out_specs=pl.BlockSpec((tn, C2), lambda i: (i, 0)),
        compiler_params=pltpu.CompilerParams(
            dimension_semantics=("parallel",)),
    )(p_pad, w_block, aux)
    return out[:N]


# ----------------------------------------------------------------------------
# Plain-JAX glue: NHWC im2col, adaptive avg-pool, parameter setup / packing
# ----------------------------------------------------------------------------
def im2col_nhwc(x, k, s):
    """x: (B, H, W, C) -> (B*Ho*Wo, k*k*C); feature order (kh, kw, c)."""
    B, H, W, C = x.shape
    Ho = (H - k) // s + 1
    Wo = (W - k) // s + 1
    cols = []
    for i in range(k):
        for j in range(k):
            cols.append(x[:, i:i + s * Ho:s, j:j + s * Wo:s, :])  # (B,Ho,Wo,C)
    patches = jnp.concatenate(cols, axis=-1)          # (B, Ho, Wo, k*k*C)
    return patches.reshape(B * Ho * Wo, k * k * C), Ho, Wo


def adaptive_avg_pool_nhwc(x, out_hw):
    """PyTorch AdaptiveAvgPool2d semantics; x: (B, H, W, C)."""
    B, H, W, C = x.shape
    oh, ow = out_hw
    rows = []
    for i in range(oh):
        hs = (i * H) // oh
        he = -(-((i + 1) * H) // oh)
        cols = []
        for j in range(ow):
            ws = (j * W) // ow
            we = -(-((j + 1) * W) // ow)
            cols.append(x[:, hs:he, ws:we, :].mean(axis=(1, 2)))  # (B, C)
        rows.append(jnp.stack(cols, axis=1))                      # (B, ow, C)
    return jnp.stack(rows, axis=1)                                # (B,oh,ow,C)


def adaptive_avg_pool_nchw(x, out_hw):
    """Reference-side pool; x: (B, C, H, W)."""
    B, C, H, W = x.shape
    oh, ow = out_hw
    rows = []
    for i in range(oh):
        hs = (i * H) // oh
        he = -(-((i + 1) * H) // oh)
        cols = []
        for j in range(ow):
            ws = (j * W) // ow
            we = -(-((j + 1) * W) // ow)
            cols.append(x[:, :, hs:he, ws:we].mean(axis=(2, 3)))
        rows.append(jnp.stack(cols, axis=-1))
    return jnp.stack(rows, axis=-2)


def init_complex_conv(key, cin, cout, k):
    k1, k2, k3, k4 = jax.random.split(key, 4)
    scale = 1.0 / np.sqrt(cin * k * k)
    wr = jax.random.uniform(k1, (cout, cin, k, k), jnp.float32, -scale, scale)
    wi = jax.random.uniform(k2, (cout, cin, k, k), jnp.float32, -scale, scale)
    br = jax.random.uniform(k3, (cout,), jnp.float32, -scale, scale)
    bi = jax.random.uniform(k4, (cout,), jnp.float32, -scale, scale)
    return dict(wr=wr, wi=wi, br=br, bi=bi)


def init_cds_e_params(key, num_classes=10):
    keys = jax.random.split(key, 5)
    feats = []
    chans = [(3, 8), (8, 16), (16, 32), (32, 32)]
    for kk, (cin, cout) in zip(keys[:4], chans):
        p = init_complex_conv(kk, cin, cout, 3)
        p["alpha_r"] = jnp.float32(0.25)     # CPReLU slopes (PReLU default)
        p["alpha_i"] = jnp.float32(0.25)
        feats.append(p)
    clf = init_complex_conv(keys[4], 32 * 2 * 2, num_classes, 1)
    return dict(features=feats, classifier=clf)


def prepare_cds_e(params, num_classes=10, cpad=64):
    """Pre-pack weights into the fused block-complex form (done ONCE)."""
    feats = []
    for p in params["features"]:
        cout, cin, k, _ = p["wr"].shape
        # weights -> (k*k*cin, cout) matching im2col_nhwc feature order (kh,kw,c)
        wr = jnp.transpose(p["wr"], (2, 3, 1, 0)).reshape(k * k * cin, cout)
        wi = jnp.transpose(p["wi"], (2, 3, 1, 0)).reshape(k * k * cin, cout)
        pad_c = cpad - cout
        wr = jnp.pad(wr, ((0, 0), (0, pad_c)))
        wi = jnp.pad(wi, ((0, 0), (0, pad_c)))
        w_block = jnp.concatenate(
            [jnp.concatenate([wr, wi], axis=1),
             jnp.concatenate([-wi, wr], axis=1)], axis=0)        # (2K, 2Cp)
        br_eff = jnp.pad(p["br"] - p["bi"], (0, pad_c))
        bi_eff = jnp.pad(p["br"] + p["bi"], (0, pad_c))
        bias_row = jnp.concatenate([br_eff, bi_eff])             # (2Cp,)
        alpha_row = jnp.concatenate(
            [jnp.full((cpad,), p["alpha_r"], jnp.float32),
             jnp.full((cpad,), p["alpha_i"], jnp.float32)])
        aux = jnp.stack([bias_row, alpha_row], axis=0)           # (2, 2Cp)
        feats.append(dict(w_block=w_block, aux=aux, cout=cout, k=k))

    clf = params["classifier"]
    nc = clf["wr"].shape[0]
    wr = clf["wr"].reshape(nc, -1).T                             # (128, nc)
    wi = clf["wi"].reshape(nc, -1).T
    w_block = jnp.concatenate(
        [jnp.concatenate([wr, wi], axis=1),
         jnp.concatenate([-wi, wr], axis=1)], axis=0)            # (256, 2nc)
    bias_row = jnp.concatenate([clf["br"] - clf["bi"], clf["br"] + clf["bi"]])
    return dict(features=feats,
                classifier=dict(w_block=w_block, bias_row=bias_row, nc=nc))


# ----------------------------------------------------------------------------
# Forward pass (Pallas kernel on every complex conv layer, NHWC end-to-end)
# ----------------------------------------------------------------------------
def complex_conv_layer(xr, xi, layer, stride):
    B = xr.shape[0]
    k = layer["k"]
    cout = layer["cout"]
    cpad = layer["w_block"].shape[1] // 2
    pr, Ho, Wo = im2col_nhwc(xr, k, stride)
    pi, _, _ = im2col_nhwc(xi, k, stride)
    p_cat = jnp.concatenate([pr, pi], axis=1)                    # (N, 2K)
    out = fused_complex_matmul_prelu(p_cat, layer["w_block"], layer["aux"])
    out = out.reshape(B, Ho, Wo, 2 * cpad)
    yr = out[..., :cout]
    yi = out[..., cpad:cpad + cout]
    return yr, yi


def cds_e_forward(x_real_nchw, x_imag_nchw, prepped, num_classes=10):
    # go to NHWC once at the top, stay there
    xr = jnp.transpose(x_real_nchw, (0, 2, 3, 1))
    xi = jnp.transpose(x_imag_nchw, (0, 2, 3, 1))
    for layer in prepped["features"]:
        xr, xi = complex_conv_layer(xr, xi, layer, stride=2)
    # avgpool -> (B, 2, 2, 32) NHWC
    xr = adaptive_avg_pool_nhwc(xr, (2, 2))
    xi = adaptive_avg_pool_nhwc(xi, (2, 2))
    B = xr.shape[0]
    # rearrange 'b c h w -> b (c h w) 1 1'  (PyTorch flatten order)
    fr = jnp.transpose(xr, (0, 3, 1, 2)).reshape(B, -1)          # (B, 128)
    fi = jnp.transpose(xi, (0, 3, 1, 2)).reshape(B, -1)
    # classifier: tiny (B,256)@(256,2nc) matmul -> plain XLA per perf review
    clf = prepped["classifier"]
    out = jnp.concatenate([fr, fi], axis=1) @ clf["w_block"] + clf["bias_row"]
    out_r = out[:, :num_classes].reshape(B, num_classes, 1, 1)
    out_i = out[:, num_classes:].reshape(B, num_classes, 1, 1)
    return out_r, out_i


# ----------------------------------------------------------------------------
# Pure-JAX reference (lax.conv, NCHW) for correctness check
# ----------------------------------------------------------------------------
def _conv_nchw(x, w, b, stride):
    out = jax.lax.conv_general_dilated(
        x, w, (stride, stride), "VALID",
        dimension_numbers=("NCHW", "OIHW", "NCHW"))
    return out + b[None, :, None, None]


def cds_e_reference(xr, xi, params, num_classes=10):
    for p in params["features"]:
        orr = _conv_nchw(xr, p["wr"], p["br"], 2)
        oii = _conv_nchw(xi, p["wi"], p["bi"], 2)
        oir = _conv_nchw(xi, p["wr"], p["br"], 2)
        ori = _conv_nchw(xr, p["wi"], p["bi"], 2)
        yr, yi = orr - oii, oir + ori
        yr = jnp.where(yr >= 0, yr, p["alpha_r"] * yr)
        yi = jnp.where(yi >= 0, yi, p["alpha_i"] * yi)
        xr, xi = yr, yi
    xr = adaptive_avg_pool_nchw(xr, (2, 2))
    xi = adaptive_avg_pool_nchw(xi, (2, 2))
    B = xr.shape[0]
    xr = xr.reshape(B, -1, 1, 1)
    xi = xi.reshape(B, -1, 1, 1)
    clf = params["classifier"]
    orr = _conv_nchw(xr, clf["wr"], clf["br"], 1)
    oii = _conv_nchw(xi, clf["wi"], clf["bi"], 1)
    oir = _conv_nchw(xi, clf["wr"], clf["br"], 1)
    ori = _conv_nchw(xr, clf["wi"], clf["bi"], 1)
    return orr - oii, oir + ori


# ----------------------------------------------------------------------------
if __name__ == "__main__":
    num_classes = 10
    key = jax.random.PRNGKey(0)
    kx, kp = jax.random.split(key)
    kxr, kxi = jax.random.split(kx)

    # Smallest spatial size that survives 4x (k=3, s=2) convs with H_out >= 2.
    B, C, H, W = 2, 3, 47, 47
    x_real = jax.random.normal(kxr, (B, C, H, W), jnp.float32)
    x_imag = jax.random.normal(kxi, (B, C, H, W), jnp.float32)

    params = init_cds_e_params(kp, num_classes)
    prepped = prepare_cds_e(params, num_classes)   # pack weights once

    fwd = jax.jit(lambda a, b: cds_e_forward(a, b, prepped, num_classes))
    out_r, out_i = fwd(x_real, x_imag)
    jax.block_until_ready((out_r, out_i))

    ref_r, ref_i = cds_e_reference(x_real, x_imag, params, num_classes)
    np.testing.assert_allclose(np.asarray(out_r), np.asarray(ref_r),
                               rtol=1e-4, atol=1e-4)
    np.testing.assert_allclose(np.asarray(out_i), np.asarray(ref_i),
                               rtol=1e-4, atol=1e-4)

    assert out_r.shape == (B, num_classes, 1, 1)
    assert out_i.shape == (B, num_classes, 1, 1)
    print("KERNEL_OK")
</pallas_src>

<mosaic_0001>
module attributes {stable_mosaic.version = 11 : i64} {
  func.func @_cplx_mm_prelu_kernel(%arg0: i32, %arg1: memref<536x54xf32, #tpu.memory_space<vmem>>, %arg2: memref<54x128xf32, #tpu.memory_space<vmem>>, %arg3: memref<2x128xf32, #tpu.memory_space<vmem>>, %arg4: memref<536x128xf32, #tpu.memory_space<vmem>>) attributes {dimension_semantics = [#tpu.dimension_semantics<parallel>], iteration_bounds = array<i64: 2>, scalar_prefetch = 0 : i64, scratch_operands = 0 : i64, tpu.core_type = #tpu.core_type<tc>, window_params = [{transform_indices = @transform_0, window_bounds = array<i64: 536, 54>}, {pipeline_mode = #tpu.pipeline_mode<synchronous>, transform_indices = @transform_1, window_bounds = array<i64: 54, 128>}, {pipeline_mode = #tpu.pipeline_mode<synchronous>, transform_indices = @transform_2, window_bounds = array<i64: 2, 128>}, {transform_indices = @transform_3, window_bounds = array<i64: 536, 128>}]} {
    %c0 = arith.constant 0 : index
    %c0_0 = arith.constant 0 : index
    %0 = vector.load %arg3[%c0, %c0_0] : memref<2x128xf32, #tpu.memory_space<vmem>>, vector<2x128xf32>
    %c0_1 = arith.constant 0 : index
    %c0_2 = arith.constant 0 : index
    %1 = vector.load %arg1[%c0_1, %c0_2] : memref<536x54xf32, #tpu.memory_space<vmem>>, vector<536x54xf32>
    %c0_3 = arith.constant 0 : index
    %c0_4 = arith.constant 0 : index
    %2 = vector.load %arg2[%c0_3, %c0_4] : memref<54x128xf32, #tpu.memory_space<vmem>>, vector<54x128xf32>
    %cst = arith.constant dense<0.000000e+00> : vector<536x128xf32>
    %3 = tpu.matmul %1, %2, %cst {dimension_numbers = #tpu.dot_dimension_numbers<[1], [0], [0], [1], [0, 0, 1, 1], [], []>} : vector<536x54xf32>, vector<54x128xf32>, vector<536x128xf32> -> vector<536x128xf32>
    %4 = vector.extract_strided_slice %0 {offsets = [0, 0], sizes = [1, 128], strides = [1, 1]} : vector<2x128xf32> to vector<1x128xf32>
    %5 = vector.broadcast %4 : vector<1x128xf32> to vector<536x128xf32>
    %6 = arith.addf %3, %5 : vector<536x128xf32>
    %7 = vector.extract_strided_slice %0 {offsets = [1, 0], sizes = [1, 128], strides = [1, 1]} : vector<2x128xf32> to vector<1x128xf32>
    %cst_5 = arith.constant 0.000000e+00 : f32
    %8 = vector.broadcast %cst_5 : f32 to vector<536x128xf32>
    %9 = arith.cmpf oge, %6, %8 : vector<536x128xf32>
    %10 = vector.broadcast %7 : vector<1x128xf32> to vector<536x128xf32>
    %11 = arith.mulf %10, %6 : vector<536x128xf32>
    %12 = arith.select %9, %6, %11 : vector<536x128xi1>, vector<536x128xf32>
    %c0_6 = arith.constant 0 : index
    %c0_7 = arith.constant 0 : index
    %13 = vector.load %arg4[%c0_6, %c0_7] : memref<536x128xf32, #tpu.memory_space<vmem>>, vector<536x128xf32>
    tpu.vector_store %arg4[%c0_6, %c0_7], %12 {strides = array<i32>} : memref<536x128xf32, #tpu.memory_space<vmem>>, vector<536x128xf32>,
    return
  }
  func.func @transform_0(%arg0: i32) -> (i32, i32) {
    %c0_i32 = arith.constant 0 : i32
    %c0_i32_0 = arith.constant 0 : i32
    return %arg0, %c0_i32 : i32, i32
  }
  func.func @transform_1(%arg0: i32) -> (i32, i32) {
    %c0_i32 = arith.constant 0 : i32
    %c0_i32_0 = arith.constant 0 : i32
    %c0_i32_1 = arith.constant 0 : i32
    return %c0_i32, %c0_i32_0 : i32, i32
  }
  func.func @transform_2(%arg0: i32) -> (i32, i32) {
    %c0_i32 = arith.constant 0 : i32
    %c0_i32_0 = arith.constant 0 : i32
    %c0_i32_1 = arith.constant 0 : i32
    return %c0_i32, %c0_i32_0 : i32, i32
  }
  func.func @transform_3(%arg0: i32) -> (i32, i32) {
    %c0_i32 = arith.constant 0 : i32
    %c0_i32_0 = arith.constant 0 : i32
    return %arg0, %c0_i32 : i32, i32
  }
}

module attributes {stable_mosaic.version = 11 : i64} {
  func.func @_cplx_mm_prelu_kernel(%arg0: i32, %arg1: memref<248x144xf32, #tpu.memory_space<vmem>>, %arg2: memref<144x128xf32, #tpu.memory_space<vmem>>, %arg3: memref<2x128xf32, #tpu.memory_space<vmem>>, %arg4: memref<248x128xf32, #tpu.memory_space<vmem>>) attributes {dimension_semantics = [#tpu.dimension_semantics<parallel>], iteration_bounds = array<i64: 1>, scalar_prefetch = 0 : i64, scratch_operands = 0 : i64, tpu.core_type = #tpu.core_type<tc>, window_params = [{transform_indices = @transform_0, window_bounds = array<i64: 248, 144>}, {pipeline_mode = #tpu.pipeline_mode<synchronous>, transform_indices = @transform_1, window_bounds = array<i64: 144, 128>}, {pipeline_mode = #tpu.pipeline_mode<synchronous>, transform_indices = @transform_2, window_bounds = array<i64: 2, 128>}, {transform_indices = @transform_3, window_bounds = array<i64: 248, 128>}]} {
    %c0 = arith.constant 0 : index
    %c0_0 = arith.constant 0 : index
    %0 = vector.load %arg3[%c0, %c0_0] : memref<2x128xf32, #tpu.memory_space<vmem>>, vector<2x128xf32>
    %c0_1 = arith.constant 0 : index
    %c0_2 = arith.constant 0 : index
    %1 = vector.load %arg1[%c0_1, %c0_2] : memref<248x144xf32, #tpu.memory_space<vmem>>, vector<248x144xf32>
    %c0_3 = arith.constant 0 : index
    %c0_4 = arith.constant 0 : index
    %2 = vector.load %arg2[%c0_3, %c0_4] : memref<144x128xf32, #tpu.memory_space<vmem>>, vector<144x128xf32>
    %cst = arith.constant dense<0.000000e+00> : vector<248x128xf32>
    %3 = tpu.matmul %1, %2, %cst {dimension_numbers = #tpu.dot_dimension_numbers<[1], [0], [0], [1], [0, 0, 1, 1], [], []>} : vector<248x144xf32>, vector<144x128xf32>, vector<248x128xf32> -> vector<248x128xf32>
    %4 = vector.extract_strided_slice %0 {offsets = [0, 0], sizes = [1, 128], strides = [1, 1]} : vector<2x128xf32> to vector<1x128xf32>
    %5 = vector.broadcast %4 : vector<1x128xf32> to vector<248x128xf32>
    %6 = arith.addf %3, %5 : vector<248x128xf32>
    %7 = vector.extract_strided_slice %0 {offsets = [1, 0], sizes = [1, 128], strides = [1, 1]} : vector<2x128xf32> to vector<1x128xf32>
    %cst_5 = arith.constant 0.000000e+00 : f32
    %8 = vector.broadcast %cst_5 : f32 to vector<248x128xf32>
    %9 = arith.cmpf oge, %6, %8 : vector<248x128xf32>
    %10 = vector.broadcast %7 : vector<1x128xf32> to vector<248x128xf32>
    %11 = arith.mulf %10, %6 : vector<248x128xf32>
    %12 = arith.select %9, %6, %11 : vector<248x128xi1>, vector<248x128xf32>
    %c0_6 = arith.constant 0 : index
    %c0_7 = arith.constant 0 : index
    %13 = vector.load %arg4[%c0_6, %c0_7] : memref<248x128xf32, #tpu.memory_space<vmem>>, vector<248x128xf32>
    tpu.vector_store %arg4[%c0_6, %c0_7], %12 {strides = array<i32>} : memref<248x128xf32, #tpu.memory_space<vmem>>, vector<248x128xf32>,
    return
  }
  func.func @transform_0(%arg0: i32) -> (i32, i32) {
    %c0_i32 = arith.constant 0 : i32
    %c0_i32_0 = arith.constant 0 : i32
    return %arg0, %c0_i32 : i32, i32
  }
  func.func @transform_1(%arg0: i32) -> (i32, i32) {
    %c0_i32 = arith.constant 0 : i32
    %c0_i32_0 = arith.constant 0 : i32
    %c0_i32_1 = arith.constant 0 : i32
    return %c0_i32, %c0_i32_0 : i32, i32
  }
  func.func @transform_2(%arg0: i32) -> (i32, i32) {
    %c0_i32 = arith.constant 0 : i32
    %c0_i32_0 = arith.constant 0 : i32
    %c0_i32_1 = arith.constant 0 : i32
    return %c0_i32, %c0_i32_0 : i32, i32
  }
  func.func @transform_3(%arg0: i32) -> (i32, i32) {
    %c0_i32 = arith.constant 0 : i32
    %c0_i32_0 = arith.constant 0 : i32
    return %arg0, %c0_i32 : i32, i32
  }
}

module attributes {stable_mosaic.version = 11 : i64} {
  func.func @_cplx_mm_prelu_kernel(%arg0: i32, %arg1: memref<56x288xf32, #tpu.memory_space<vmem>>, %arg2: memref<288x128xf32, #tpu.memory_space<vmem>>, %arg3: memref<2x128xf32, #tpu.memory_space<vmem>>, %arg4: memref<56x128xf32, #tpu.memory_space<vmem>>) attributes {dimension_semantics = [#tpu.dimension_semantics<parallel>], iteration_bounds = array<i64: 1>, scalar_prefetch = 0 : i64, scratch_operands = 0 : i64, tpu.core_type = #tpu.core_type<tc>, window_params = [{transform_indices = @transform_0, window_bounds = array<i64: 56, 288>}, {pipeline_mode = #tpu.pipeline_mode<synchronous>, transform_indices = @transform_1, window_bounds = array<i64: 288, 128>}, {pipeline_mode = #tpu.pipeline_mode<synchronous>, transform_indices = @transform_2, window_bounds = array<i64: 2, 128>}, {transform_indices = @transform_3, window_bounds = array<i64: 56, 128>}]} {
    %c0 = arith.constant 0 : index
    %c0_0 = arith.constant 0 : index
    %0 = vector.load %arg3[%c0, %c0_0] : memref<2x128xf32, #tpu.memory_space<vmem>>, vector<2x128xf32>
    %c0_1 = arith.constant 0 : index
    %c0_2 = arith.constant 0 : index
    %1 = vector.load %arg1[%c0_1, %c0_2] : memref<56x288xf32, #tpu.memory_space<vmem>>, vector<56x288xf32>
    %c0_3 = arith.constant 0 : index
    %c0_4 = arith.constant 0 : index
    %2 = vector.load %arg2[%c0_3, %c0_4] : memref<288x128xf32, #tpu.memory_space<vmem>>, vector<288x128xf32>
    %cst = arith.constant dense<0.000000e+00> : vector<56x128xf32>
    %3 = tpu.matmul %1, %2, %cst {dimension_numbers = #tpu.dot_dimension_numbers<[1], [0], [0], [1], [0, 0, 1, 1], [], []>} : vector<56x288xf32>, vector<288x128xf32>, vector<56x128xf32> -> vector<56x128xf32>
    %4 = vector.extract_strided_slice %0 {offsets = [0, 0], sizes = [1, 128], strides = [1, 1]} : vector<2x128xf32> to vector<1x128xf32>
    %5 = vector.broadcast %4 : vector<1x128xf32> to vector<56x128xf32>
    %6 = arith.addf %3, %5 : vector<56x128xf32>
    %7 = vector.extract_strided_slice %0 {offsets = [1, 0], sizes = [1, 128], strides = [1, 1]} : vector<2x128xf32> to vector<1x128xf32>
    %cst_5 = arith.constant 0.000000e+00 : f32
    %8 = vector.broadcast %cst_5 : f32 to vector<56x128xf32>
    %9 = arith.cmpf oge, %6, %8 : vector<56x128xf32>
    %10 = vector.broadcast %7 : vector<1x128xf32> to vector<56x128xf32>
    %11 = arith.mulf %10, %6 : vector<56x128xf32>
    %12 = arith.select %9, %6, %11 : vector<56x128xi1>, vector<56x128xf32>
    %c0_6 = arith.constant 0 : index
    %c0_7 = arith.constant 0 : index
    %13 = vector.load %arg4[%c0_6, %c0_7] : memref<56x128xf32, #tpu.memory_space<vmem>>, vector<56x128xf32>
    tpu.vector_store %arg4[%c0_6, %c0_7], %12 {strides = array<i32>} : memref<56x128xf32, #tpu.memory_space<vmem>>, vector<56x128xf32>,
    return
  }
  func.func @transform_0(%arg0: i32) -> (i32, i32) {
    %c0_i32 = arith.constant 0 : i32
    %c0_i32_0 = arith.constant 0 : i32
    return %arg0, %c0_i32 : i32, i32
  }
  func.func @transform_1(%arg0: i32) -> (i32, i32) {
    %c0_i32 = arith.constant 0 : i32
    %c0_i32_0 = arith.constant 0 : i32
    %c0_i32_1 = arith.constant 0 : i32
    return %c0_i32, %c0_i32_0 : i32, i32
  }
  func.func @transform_2(%arg0: i32) -> (i32, i32) {
    %c0_i32 = arith.constant 0 : i32
    %c0_i32_0 = arith.constant 0 : i32
    %c0_i32_1 = arith.constant 0 : i32
    return %c0_i32, %c0_i32_0 : i32, i32
  }
  func.func @transform_3(%arg0: i32) -> (i32, i32) {
    %c0_i32 = arith.constant 0 : i32
    %c0_i32_0 = arith.constant 0 : i32
    return %arg0, %c0_i32 : i32, i32
  }
}

module attributes {stable_mosaic.version = 11 : i64} {
  func.func @_cplx_mm_prelu_kernel(%arg0: i32, %arg1: memref<8x576xf32, #tpu.memory_space<vmem>>, %arg2: memref<576x128xf32, #tpu.memory_space<vmem>>, %arg3: memref<2x128xf32, #tpu.memory_space<vmem>>, %arg4: memref<8x128xf32, #tpu.memory_space<vmem>>) attributes {dimension_semantics = [#tpu.dimension_semantics<parallel>], iteration_bounds = array<i64: 1>, scalar_prefetch = 0 : i64, scratch_operands = 0 : i64, tpu.core_type = #tpu.core_type<tc>, window_params = [{transform_indices = @transform_0, window_bounds = array<i64: 8, 576>}, {pipeline_mode = #tpu.pipeline_mode<synchronous>, transform_indices = @transform_1, window_bounds = array<i64: 576, 128>}, {pipeline_mode = #tpu.pipeline_mode<synchronous>, transform_indices = @transform_2, window_bounds = array<i64: 2, 128>}, {transform_indices = @transform_3, window_bounds = array<i64: 8, 128>}]} {
    %c0 = arith.constant 0 : index
    %c0_0 = arith.constant 0 : index
    %0 = vector.load %arg3[%c0, %c0_0] : memref<2x128xf32, #tpu.memory_space<vmem>>, vector<2x128xf32>
    %c0_1 = arith.constant 0 : index
    %c0_2 = arith.constant 0 : index
    %1 = vector.load %arg1[%c0_1, %c0_2] : memref<8x576xf32, #tpu.memory_space<vmem>>, vector<8x576xf32>
    %c0_3 = arith.constant 0 : index
    %c0_4 = arith.constant 0 : index
    %2 = vector.load %arg2[%c0_3, %c0_4] : memref<576x128xf32, #tpu.memory_space<vmem>>, vector<576x128xf32>
    %cst = arith.constant dense<0.000000e+00> : vector<8x128xf32>
    %3 = tpu.matmul %1, %2, %cst {dimension_numbers = #tpu.dot_dimension_numbers<[1], [0], [0], [1], [0, 0, 1, 1], [], []>} : vector<8x576xf32>, vector<576x128xf32>, vector<8x128xf32> -> vector<8x128xf32>
    %4 = vector.extract_strided_slice %0 {offsets = [0, 0], sizes = [1, 128], strides = [1, 1]} : vector<2x128xf32> to vector<1x128xf32>
    %5 = vector.broadcast %4 : vector<1x128xf32> to vector<8x128xf32>
    %6 = arith.addf %3, %5 : vector<8x128xf32>
    %7 = vector.extract_strided_slice %0 {offsets = [1, 0], sizes = [1, 128], strides = [1, 1]} : vector<2x128xf32> to vector<1x128xf32>
    %cst_5 = arith.constant 0.000000e+00 : f32
    %8 = vector.broadcast %cst_5 : f32 to vector<8x128xf32>
    %9 = arith.cmpf oge, %6, %8 : vector<8x128xf32>
    %10 = vector.broadcast %7 : vector<1x128xf32> to vector<8x128xf32>
    %11 = arith.mulf %10, %6 : vector<8x128xf32>
    %12 = arith.select %9, %6, %11 : vector<8x128xi1>, vector<8x128xf32>
    %c0_6 = arith.constant 0 : index
    %c0_7 = arith.constant 0 : index
    %13 = vector.load %arg4[%c0_6, %c0_7] : memref<8x128xf32, #tpu.memory_space<vmem>>, vector<8x128xf32>
    tpu.vector_store %arg4[%c0_6, %c0_7], %12 {strides = array<i32>} : memref<8x128xf32, #tpu.memory_space<vmem>>, vector<8x128xf32>,
    return
  }
  func.func @transform_0(%arg0: i32) -> (i32, i32) {
    %c0_i32 = arith.constant 0 : i32
    %c0_i32_0 = arith.constant 0 : i32
    return %arg0, %c0_i32 : i32, i32
  }
  func.func @transform_1(%arg0: i32) -> (i32, i32) {
    %c0_i32 = arith.constant 0 : i32
    %c0_i32_0 = arith.constant 0 : i32
    %c0_i32_1 = arith.constant 0 : i32
    return %c0_i32, %c0_i32_0 : i32, i32
  }
  func.func @transform_2(%arg0: i32) -> (i32, i32) {
    %c0_i32 = arith.constant 0 : i32
    %c0_i32_0 = arith.constant 0 : i32
    %c0_i32_1 = arith.constant 0 : i32
    return %c0_i32, %c0_i32_0 : i32, i32
  }
  func.func @transform_3(%arg0: i32) -> (i32, i32) {
    %c0_i32 = arith.constant 0 : i32
    %c0_i32_0 = arith.constant 0 : i32
    return %arg0, %c0_i32 : i32, i32
  }
}

</mosaic_0001>

<bundles_post_ra>
// kernel: _lambda_.4
= control target key start
LH: loop header
LB: loop body
LE: loop exit
PB: predicated region body
PF: predicated region fallthrough
CT: control target
= control target key end

     0   :  { %s1612_s12 = smov 0   ;;  %s2139_s0 = inlined_call_operand.vmem [shape: f32[1072,54], index: 0, kind: input, shape index: {}]   ;;  %s2140_s1 = inlined_call_operand.vmem [shape: f32[54,128], index: 1, kind: input, shape index: {}]   ;;  %s2141_s2 = inlined_call_operand.vmem [shape: f32[2,128], index: 2, kind: input, shape index: {}]   ;;  %s2142_s3 = inlined_call_operand.vmem [shape: f32[1072,128], index: 3, kind: output, shape index: {}]  }
   0x1 LB: > { %s1187_s13 = sadd.s32 4294967295, %s1587_s12   ;;  %p1191_p0 = scmp.ge.s32.totalorder %s1587_s12, 1  ;;  %s1587_s12 = sphi %s1612_s12, %s13_s12  }
   0x2   : > { %p138_p1 = scmp.lt.s32.totalorder %s1587_s12, 3 }
   0x4   : > { %p139_p2 = pnand %p1191_p0, %p138_p1 }
   0x5   : > { %v242_v0 = vld [vmem:[%s2140_s1] sm:$0xff] (!%p139_p2)  ;;  %v243_v1 = vld [vmem:[%s2140_s1 + $0x8] sm:$0xff] (!%p139_p2)  ;;  %v244_v2 = vld [vmem:[%s2140_s1 + $0x10] sm:$0xff] (!%p139_p2)  ;;  %v1589_v3 = vmov (!%p139_p2), 0.0|0.0   ;;  %s162_s22 = smul.u32 (!%p139_p2), 67, %s1187_s13  ;;  %vm1590_vm0 = vmmov (!%p139_p2), 0  }
   0x6   : > { %142 = sbr.rel (%p139_p2) target bundleno = 371 (0x173), region = 32  ;;  %1553 = vmatprep.subr.bf16.mxu0 (!%p139_p2), %v1589_v3  ;;  %v1554_v4 = vpack.c.bf16 (!%p139_p2), %v243_v1, %v242_v0  ;;  %1562 = vmatprep.subr.bf16.mxu1 (!%p139_p2), %v1589_v3  ;;  %v245_v5 = vld [vmem:[%s2140_s1 + $0x18] sm:$0xff] (!%p139_p2)  ;;  %v1591_v6 = vmov (!%p139_p2), 0.0   ;;  %v246_v8 = vld [vmem:[%s2140_s1 + $0x20] sm:$0xff] (!%p139_p2)  ;;  %v247_v9 = vld [vmem:[%s2140_s1 + $0x28] sm:$0xff] (!%p139_p2)  ;;  %vm455_vm1 = vcmask (!%p139_p2), 1045504  }
   0x7   : > { %1352 = vmatprep.mubr.msk.f32.mxu0 (!%p139_p2), %vm1590_vm0, %v1591_v6  ;;  %1454 = vmatprep.mubr.msk.f32.mxu1 (!%p139_p2), %vm1590_vm0, %v1591_v6  ;;  %v1557_v7 = vpack.c.bf16 (!%p139_p2), %v245_v5, %v244_v2  ;;  %p163_p3 = scmp.lt.s32.totalorder (!%p139_p2), %s162_s22, 133  ;;  %v1560_v10 = vpack.c.bf16 (!%p139_p2), %v247_v9, %v246_v8  ;;  %v248_v11 = vld [vmem:[%s2140_s1 + $0x30] sm:$0x3f] (!%p139_p2)  ;;  %vm253_vm2 = vcmask (!%p139_p2), 441344  }
   0x8   : > { %1555 = vmatpush3.bf16.msra.mxu0 (!%p139_p2), %v1554_v4  ;;  %1566 = vmatpush3.bf16.msra.mxu1 (!%p139_p2), %v1554_v4 }
   0x9   : > { %1556 = vmatprep.subr.bf16.mxu0 (!%p139_p2), %v1589_v3  ;;  %1563 = vmatprep.subr.bf16.mxu1 (!%p139_p2), %v1589_v3 }
   0xc   : > { %1558 = vmatpush3.bf16.msra.mxu0 (!%p139_p2), %v1557_v7  ;;  %1567 = vmatpush3.bf16.msra.mxu1 (!%p139_p2), %v1557_v7 }
   0xd   : > { %s2144_s22 = smov (!%p163_p3, %s162_s22), 133  ;;  %1559 = vmatprep.subr.bf16.mxu0 %v1589_v3  ;;  %1564 = vmatprep.subr.bf16.mxu1 %v1589_v3 }
   0xe   : > { %s1192_s27 = sshll.u32 %s2144_s22, 3 }
   0xf   : > { %s1650_s30 = scalar_lea.vmem %s2139_s0, %s1192_s27  ;;  %s1935_s10 = scalar_lea.vmem %s2142_s3, %s1192_s27 }
  0x10   : > { %1561 = vmatpush3.bf16.msra.mxu0 %v1560_v10  ;;  %1568 = vmatpush3.bf16.msra.mxu1 %v1560_v10  ;;  %v175_v12 = vld [vmem:[%s1650_s30] sm:$0xff]  ;;  %v209_v13 = vld [vmem:[%s1650_s30 + $0x110] sm:$0xff]  ;;  %v176_v14 = vld [vmem:[%s1650_s30 + $0x8] sm:$0xff] }
  0x11   : > { %1350 = vmatprep.subr.mxu0 %v1591_v6  ;;  %1565 = vmatprep.subr.mxu1 %v1591_v6  ;;  %v210_v15 = vld [vmem:[%s1650_s30 + $0x118] sm:$0xff]  ;;  %v177_v16 = vld [vmem:[%s1650_s30 + $0x10] sm:$0xff]  ;;  %v211_v17 = vld [vmem:[%s1650_s30 + $0x120] sm:$0xff] }
  0x12   : > { %v178_v18 = vld [vmem:[%s1650_s30 + $0x18] sm:$0xff]  ;;  %v212_v19 = vld [vmem:[%s1650_s30 + $0x128] sm:$0xff]  ;;  %v179_v20 = vld [vmem:[%s1650_s30 + $0x20] sm:$0xff] }
  0x13   : > { %v213_v21 = vld [vmem:[%s1650_s30 + $0x130] sm:$0xff]  ;;  %v180_v22 = vld [vmem:[%s1650_s30 + $0x28] sm:$0xff]  ;;  %v214_v23 = vld [vmem:[%s1650_s30 + $0x138] sm:$0xff] }
  0x14   : > { %1351 = vmatpush3.msk.msra.mxu0 %vm455_vm1, %v248_v11  ;;  %1569 = vmatpush3.msk.msra.mxu1 %vm455_vm1, %v248_v11  ;;  %v181_v24 = vld [vmem:[%s1650_s30 + $0x30] sm:$0xff]  ;;  %v215_v25 = vld [vmem:[%s1650_s30 + $0x140] sm:$0xff]  ;;  %v182_v26 = vld [vmem:[%s1650_s30 + $0x38] sm:$0xff] }
  0x15   : > { %1353 = vmatmul.mubr.msk.f32.vlgmr.msra.gmra.mrb[0].mxu0 %vm253_vm2, %v175_v12  ;;  %1455 = vmatmul.mubr.msk.f32.vlgmr.msra.gmra.mrb[0].mxu1 %vm253_vm2, %v209_v13  ;;  %v216_v27 = vld [vmem:[%s1650_s30 + $0x148] sm:$0xff]  ;;  %v183_v28 = vld [vmem:[%s1650_s30 + $0x40] sm:$0xff]  ;;  %v217_v29 = vld [vmem:[%s1650_s30 + $0x150] sm:$0xff] }
  0x16   : > { %1355 = vmatprep.mubr.msk.f32.mxu0 %vm1590_vm0, %v1591_v6  ;;  %1457 = vmatprep.mubr.msk.f32.mxu1 %vm1590_vm0, %v1591_v6  ;;  %v184_v30 = vld [vmem:[%s1650_s30 + $0x48] sm:$0xff]  ;;  %v218_v31 = vld [vmem:[%s1650_s30 + $0x158] sm:$0xff]  ;;  %v185_v32 = vld [vmem:[%s1650_s30 + $0x50] sm:$0xff] }
  0x17   : > { %v219_v33 = vld [vmem:[%s1650_s30 + $0x160] sm:$0xff]  ;;  %v186_v34 = vld [vmem:[%s1650_s30 + $0x58] sm:$0xff]  ;;  %v220_v35 = vld [vmem:[%s1650_s30 + $0x168] sm:$0xff] }
  0x18   : > { %v187_v36 = vld [vmem:[%s1650_s30 + $0x60] sm:$0xff]  ;;  %v221_v37 = vld [vmem:[%s1650_s30 + $0x170] sm:$0xff]  ;;  %v188_v38 = vld [vmem:[%s1650_s30 + $0x68] sm:$0xff] }
  0x19   : > { %1356 = vmatmul.mubr.msk.f32.gmra.mrb[2].mxu0 %vm253_vm2, %v176_v14  ;;  %1458 = vmatmul.mubr.msk.f32.gmra.mrb[2].mxu1 %vm253_vm2, %v210_v15  ;;  %v222_v39 = vld [vmem:[%s1650_s30 + $0x178] sm:$0xff]  ;;  %v189_v40 = vld [vmem:[%s1650_s30 + $0x70] sm:$0xff]  ;;  %v223_v41 = vld [vmem:[%s1650_s30 + $0x180] sm:$0xff] }
  0x1a   : > { %1358 = vmatprep.mubr.msk.f32.mxu0 %vm1590_vm0, %v1591_v6  ;;  %1460 = vmatprep.mubr.msk.f32.mxu1 %vm1590_vm0, %v1591_v6  ;;  %v190_v42 = vld [vmem:[%s1650_s30 + $0x78] sm:$0xff]  ;;  %v224_v43 = vld [vmem:[%s1650_s30 + $0x188] sm:$0xff]  ;;  %v191_v44 = vld [vmem:[%s1650_s30 + $0x80] sm:$0xff] }
  0x1b   : > { %v225_v45 = vld [vmem:[%s1650_s30 + $0x190] sm:$0xff]  ;;  %v192_v46 = vld [vmem:[%s1650_s30 + $0x88] sm:$0xff]  ;;  %v226_v47 = vld [vmem:[%s1650_s30 + $0x198] sm:$0xff] }
  0x1c   : > { %v193_v48 = vld [vmem:[%s1650_s30 + $0x90] sm:$0xff]  ;;  %v227_v49 = vld [vmem:[%s1650_s30 + $0x1a0] sm:$0xff]  ;;  %v194_v50 = vld [vmem:[%s1650_s30 + $0x98] sm:$0xff] }
  0x1d   : > { %1359 = vmatmul.mubr.msk.f32.gmra.mrb[4].mxu0 %vm253_vm2, %v177_v16  ;;  %1461 = vmatmul.mubr.msk.f32.gmra.mrb[4].mxu1 %vm253_vm2, %v211_v17  ;;  %v228_v51 = vld [vmem:[%s1650_s30 + $0x1a8] sm:$0xff]  ;;  %v195_v52 = vld [vmem:[%s1650_s30 + $0xa0] sm:$0xff]  ;;  %v229_v53 = vld [vmem:[%s1650_s30 + $0x1b0] sm:$0xff]  ;;  %v249_v16 = vlaneseq }
  0x1e   : > { %1361 = vmatprep.mubr.msk.f32.mxu0 %vm1590_vm0, %v1591_v6  ;;  %1463 = vmatprep.mubr.msk.f32.mxu1 %vm1590_vm0, %v1591_v6  ;;  %v196_v54 = vld [vmem:[%s1650_s30 + $0xa8] sm:$0xff]  ;;  %v230_v55 = vld [vmem:[%s1650_s30 + $0x1b8] sm:$0xff]  ;;  %v197_v56 = vld [vmem:[%s1650_s30 + $0xb0] sm:$0xff] }
  0x1f   : > { %v231_v57 = vld [vmem:[%s1650_s30 + $0x1c0] sm:$0xff]  ;;  %v198_v58 = vld [vmem:[%s1650_s30 + $0xb8] sm:$0xff]  ;;  %v232_v59 = vld [vmem:[%s1650_s30 + $0x1c8] sm:$0xff]  ;;  %v250_v17 = vshrl.u32 %v249_v16, 7 }
  0x20   : > { %v199_v60 = vld [vmem:[%s1650_s30 + $0xc0] sm:$0xff]  ;;  %v233_v61 = vld [vmem:[%s1650_s30 + $0x1d0] sm:$0xff]  ;;  %v200_v62 = vld [vmem:[%s1650_s30 + $0xc8] sm:$0xff] }
  0x21   : > { %1362 = vmatmul.mubr.msk.f32.gmra.mrb[6].mxu0 %vm253_vm2, %v178_v18  ;;  %1464 = vmatmul.mubr.msk.f32.gmra.mrb[6].mxu1 %vm253_vm2, %v212_v19  ;;  %v234_v63 = vld [vmem:[%s1650_s30 + $0x1d8] sm:$0xff]  ;;  %v201_v0 = vld [vmem:[%s1650_s30 + $0xd0] sm:$0xff]  ;;  %v235_v1 = vld [vmem:[%s1650_s30 + $0x1e0] sm:$0xff]  ;;  %v251_v18 = vsub.s32 0, %v250_v17 }
  0x22   : > { %1364 = vmatprep.mubr.msk.f32.mxu0 %vm1590_vm0, %v1591_v6  ;;  %1466 = vmatprep.mubr.msk.f32.mxu1 %vm1590_vm0, %v1591_v6  ;;  %v202_v2 = vld [vmem:[%s1650_s30 + $0xd8] sm:$0xff]  ;;  %v236_v3 = vld [vmem:[%s1650_s30 + $0x1e8] sm:$0xff]  ;;  %v203_v4 = vld [vmem:[%s1650_s30 + $0xe0] sm:$0xff] }
  0x23   : > { %v237_v5 = vld [vmem:[%s1650_s30 + $0x1f0] sm:$0xff]  ;;  %v204_v7 = vld [vmem:[%s1650_s30 + $0xe8] sm:$0xff]  ;;  %v238_v8 = vld [vmem:[%s1650_s30 + $0x1f8] sm:$0xff] }
  0x24   : > { %v205_v9 = vld [vmem:[%s1650_s30 + $0xf0] sm:$0xff]  ;;  %v239_v10 = vld [vmem:[%s1650_s30 + $0x200] sm:$0xff]  ;;  %v206_v11 = vld [vmem:[%s1650_s30 + $0xf8] sm:$0xff] }
  0x25   : > { %1365 = vmatmul.mubr.msk.f32.gmra.mrb[8].mxu0 %vm253_vm2, %v179_v20  ;;  %1467 = vmatmul.mubr.msk.f32.gmra.mrb[8].mxu1 %vm253_vm2, %v213_v21  ;;  %v240_v12 = vld [vmem:[%s1650_s30 + $0x208] sm:$0xff]  ;;  %v207_v13 = vld [vmem:[%s1650_s30 + $0x100] sm:$0xff]  ;;  %v241_v14 = vld [vmem:[%s1650_s30 + $0x210] sm:$0xff]  ;;  %v928_v20 = vsub.s32 1, %v250_v17 }
  0x26   : > { %1367 = vmatprep.mubr.msk.f32.mxu0 %vm1590_vm0, %v1591_v6  ;;  %1469 = vmatprep.mubr.msk.f32.mxu1 %vm1590_vm0, %v1591_v6  ;;  %v208_v15 = vld [vmem:[%s1650_s30 + $0x108] sm:$0xff]  ;;  %v174_v19 = vld [vmem:[%s2141_s2] sm:$0x3] }
  0x27   : > { %v1924_v21 = vrot.slane %v174_v19, %v251_v18 }
  0x29   : > { %1368 = vmatmul.mubr.msk.f32.gmra.mrb[10].mxu0 %vm253_vm2, %v180_v22  ;;  %1470 = vmatmul.mubr.msk.f32.gmra.mrb[10].mxu1 %vm253_vm2, %v214_v23  ;;  %v1926_v22 = vrot.slane %v174_v19, %v928_v20 }
  0x2a   : > { %1370 = vmatprep.mubr.msk.f32.mxu0 %vm1590_vm0, %v1591_v6  ;;  %1472 = vmatprep.mubr.msk.f32.mxu1 %vm1590_vm0, %v1591_v6 }
  0x2d   : > { %1371 = vmatmul.mubr.msk.f32.gmra.mrb[12].mxu0 %vm253_vm2, %v181_v24  ;;  %1473 = vmatmul.mubr.msk.f32.gmra.mrb[12].mxu1 %vm253_vm2, %v215_v25 }
  0x2e   : > { %1373 = vmatprep.mubr.msk.f32.mxu0 %vm1590_vm0, %v1591_v6  ;;  %1475 = vmatprep.mubr.msk.f32.mxu1 %vm1590_vm0, %v1591_v6 }
  0x31   : > { %1374 = vmatmul.mubr.msk.f32.gmra.mrb[14].mxu0 %vm253_vm2, %v182_v26  ;;  %1476 = vmatmul.mubr.msk.f32.gmra.mrb[14].mxu1 %vm253_vm2, %v216_v27 }
  0x32   : > { %1376 = vmatprep.mubr.msk.f32.mxu0 %vm1590_vm0, %v1591_v6  ;;  %1478 = vmatprep.mubr.msk.f32.mxu1 %vm1590_vm0, %v1591_v6 }
  0x35   : > { %1377 = vmatmul.mubr.msk.f32.gmra.mrb[16].mxu0 %vm253_vm2, %v183_v28  ;;  %1479 = vmatmul.mubr.msk.f32.gmra.mrb[16].mxu1 %vm253_vm2, %v217_v29 }
  0x36   : > { %1379 = vmatprep.mubr.msk.f32.mxu0 %vm1590_vm0, %v1591_v6  ;;  %1481 = vmatprep.mubr.msk.f32.mxu1 %vm1590_vm0, %v1591_v6 }
  0x39   : > { %1380 = vmatmul.mubr.msk.f32.gmra.mrb[18].mxu0 %vm253_vm2, %v184_v30  ;;  %1482 = vmatmul.mubr.msk.f32.gmra.mrb[18].mxu1 %vm253_vm2, %v218_v31 }
  0x3a   : > { %1382 = vmatprep.mubr.msk.f32.mxu0 %vm1590_vm0, %v1591_v6  ;;  %1484 = vmatprep.mubr.msk.f32.mxu1 %vm1590_vm0, %v1591_v6 }
  0x3d   : > { %1383 = vmatmul.mubr.msk.f32.gmra.mrb[20].mxu0 %vm253_vm2, %v185_v32  ;;  %1485 = vmatmul.mubr.msk.f32.gmra.mrb[20].mxu1 %vm253_vm2, %v219_v33 }
  0x3e   : > { %1385 = vmatprep.mubr.msk.f32.mxu0 %vm1590_vm0, %v1591_v6  ;;  %1487 = vmatprep.mubr.msk.f32.mxu1 %vm1590_vm0, %v1591_v6 }
  0x41   : > { %1386 = vmatmul.mubr.msk.f32.gmra.mrb[22].mxu0 %vm253_vm2, %v186_v34  ;;  %1488 = vmatmul.mubr.msk.f32.gmra.mrb[22].mxu1 %vm253_vm2, %v220_v35 }
  0x42   : > { %1388 = vmatprep.mubr.msk.f32.mxu0 %vm1590_vm0, %v1591_v6  ;;  %1490 = vmatprep.mubr.msk.f32.mxu1 %vm1590_vm0, %v1591_v6 }
  0x45   : > { %1389 = vmatmul.mubr.msk.f32.gmra.mrb[24].mxu0 %vm253_vm2, %v187_v36  ;;  %1491 = vmatmul.mubr.msk.f32.gmra.mrb[24].mxu1 %vm253_vm2, %v221_v37 }
  0x46   : > { %1391 = vmatprep.mubr.msk.f32.mxu0 %vm1590_vm0, %v1591_v6  ;;  %1493 = vmatprep.mubr.msk.f32.mxu1 %vm1590_vm0, %v1591_v6 }
  0x49   : > { %1392 = vmatmul.mubr.msk.f32.gmra.mrb[26].mxu0 %vm253_vm2, %v188_v38  ;;  %1494 = vmatmul.mubr.msk.f32.gmra.mrb[26].mxu1 %vm253_vm2, %v222_v39 }
  0x4a   : > { %1394 = vmatprep.mubr.msk.f32.mxu0 %vm1590_vm0, %v1591_v6  ;;  %1496 = vmatprep.mubr.msk.f32.mxu1 %vm1590_vm0, %v1591_v6 }
  0x4d   : > { %1395 = vmatmul.mubr.msk.f32.gmra.mrb[28].mxu0 %vm253_vm2, %v189_v40  ;;  %1497 = vmatmul.mubr.msk.f32.gmra.mrb[28].mxu1 %vm253_vm2, %v223_v41 }
  0x4e   : > { %1397 = vmatprep.mubr.msk.f32.mxu0 %vm1590_vm0, %v1591_v6  ;;  %1499 = vmatprep.mubr.msk.f32.mxu1 %vm1590_vm0, %v1591_v6 }
  0x51   : > { %1398 = vmatmul.mubr.msk.f32.gmra.mrb[30].mxu0 %vm253_vm2, %v190_v42  ;;  %1500 = vmatmul.mubr.msk.f32.gmra.mrb[30].mxu1 %vm253_vm2, %v224_v43 }
  0x52   : > { %1400 = vmatprep.mubr.msk.f32.mxu0 %vm1590_vm0, %v1591_v6  ;;  %1502 = vmatprep.mubr.msk.f32.mxu1 %vm1590_vm0, %v1591_v6 }
  0x55   : > { %1401 = vmatmul.mubr.msk.f32.gmra.mrb[32].mxu0 %vm253_vm2, %v191_v44  ;;  %1503 = vmatmul.mubr.msk.f32.gmra.mrb[32].mxu1 %vm253_vm2, %v225_v45 }
  0x56   : > { %1403 = vmatprep.mubr.msk.f32.mxu0 %vm1590_vm0, %v1591_v6  ;;  %1505 = vmatprep.mubr.msk.f32.mxu1 %vm1590_vm0, %v1591_v6 }
  0x59   : > { %1404 = vmatmul.mubr.msk.f32.gmra.mrb[34].mxu0 %vm253_vm2, %v192_v46  ;;  %1506 = vmatmul.mubr.msk.f32.gmra.mrb[34].mxu1 %vm253_vm2, %v226_v47 }
  0x5a   : > { %1406 = vmatprep.mubr.msk.f32.mxu0 %vm1590_vm0, %v1591_v6  ;;  %1508 = vmatprep.mubr.msk.f32.mxu1 %vm1590_vm0, %v1591_v6 }
  0x5d   : > { %1407 = vmatmul.mubr.msk.f32.gmra.mrb[36].mxu0 %vm253_vm2, %v193_v48  ;;  %1509 = vmatmul.mubr.msk.f32.gmra.mrb[36].mxu1 %vm253_vm2, %v227_v49 }
  0x5e   : > { %1409 = vmatprep.mubr.msk.f32.mxu0 %vm1590_vm0, %v1591_v6  ;;  %1511 = vmatprep.mubr.msk.f32.mxu1 %vm1590_vm0, %v1591_v6 }
  0x61   : > { %1410 = vmatmul.mubr.msk.f32.gmra.mrb[38].mxu0 %vm253_vm2, %v194_v50  ;;  %1512 = vmatmul.mubr.msk.f32.gmra.mrb[38].mxu1 %vm253_vm2, %v228_v51 }
  0x62   : > { %1412 = vmatprep.mubr.msk.f32.mxu0 %vm1590_vm0, %v1591_v6  ;;  %1514 = vmatprep.mubr.msk.f32.mxu1 %vm1590_vm0, %v1591_v6 }
  0x65   : > { %1413 = vmatmul.mubr.msk.f32.gmra.mrb[40].mxu0 %vm253_vm2, %v195_v52  ;;  %1515 = vmatmul.mubr.msk.f32.gmra.mrb[40].mxu1 %vm253_vm2, %v229_v53 }
  0x66   : > { %1415 = vmatprep.mubr.msk.f32.mxu0 %vm1590_vm0, %v1591_v6  ;;  %1517 = vmatprep.mubr.msk.f32.mxu1 %vm1590_vm0, %v1591_v6 }
  0x69   : > { %1416 = vmatmul.mubr.msk.f32.gmra.mrb[42].mxu0 %vm253_vm2, %v196_v54  ;;  %1518 = vmatmul.mubr.msk.f32.gmra.mrb[42].mxu1 %vm253_vm2, %v230_v55 }
  0x6a   : > { %1418 = vmatprep.mubr.msk.f32.mxu0 %vm1590_vm0, %v1591_v6  ;;  %1520 = vmatprep.mubr.msk.f32.mxu1 %vm1590_vm0, %v1591_v6 }
  0x6d   : > { %1419 = vmatmul.mubr.msk.f32.gmra.mrb[44].mxu0 %vm253_vm2, %v197_v56  ;;  %1521 = vmatmul.mubr.msk.f32.gmra.mrb[44].mxu1 %vm253_vm2, %v231_v57 }
  0x6e   : > { %1421 = vmatprep.mubr.msk.f32.mxu0 %vm1590_vm0, %v1591_v6  ;;  %1523 = vmatprep.mubr.msk.f32.mxu1 %vm1590_vm0, %v1591_v6 }
  0x71   : > { %1422 = vmatmul.mubr.msk.f32.gmra.mrb[46].mxu0 %vm253_vm2, %v198_v58  ;;  %1524 = vmatmul.mubr.msk.f32.gmra.mrb[46].mxu1 %vm253_vm2, %v232_v59 }
  0x72   : > { %1424 = vmatprep.mubr.msk.f32.mxu0 %vm1590_vm0, %v1591_v6  ;;  %1526 = vmatprep.mubr.msk.f32.mxu1 %vm1590_vm0, %v1591_v6 }
  0x75   : > { %1425 = vmatmul.mubr.msk.f32.gmra.mrb[48].mxu0 %vm253_vm2, %v199_v60  ;;  %1527 = vmatmul.mubr.msk.f32.gmra.mrb[48].mxu1 %vm253_vm2, %v233_v61 }
  0x76   : > { %1427 = vmatprep.mubr.msk.f32.mxu0 %vm1590_vm0, %v1591_v6  ;;  %1529 = vmatprep.mubr.msk.f32.mxu1 %vm1590_vm0, %v1591_v6 }
  0x79   : > { %1428 = vmatmul.mubr.msk.f32.gmra.mrb[50].mxu0 %vm253_vm2, %v200_v62  ;;  %1530 = vmatmul.mubr.msk.f32.gmra.mrb[50].mxu1 %vm253_vm2, %v234_v63 }
  0x7a   : > { %1430 = vmatprep.mubr.msk.f32.mxu0 %vm1590_vm0, %v1591_v6  ;;  %1532 = vmatprep.mubr.msk.f32.mxu1 %vm1590_vm0, %v1591_v6 }
  0x7d   : > { %1431 = vmatmul.mubr.msk.f32.gmra.mrb[52].mxu0 %vm253_vm2, %v201_v0  ;;  %1533 = vmatmul.mubr.msk.f32.gmra.mrb[52].mxu1 %vm253_vm2, %v235_v1 }
  0x7e   : > { %1433 = vmatprep.mubr.msk.f32.mxu0 %vm1590_vm0, %v1591_v6  ;;  %1535 = vmatprep.mubr.msk.f32.mxu1 %vm1590_vm0, %v1591_v6 }
  0x81   : > { %1434 = vmatmul.mubr.msk.f32.gmra.mrb[54].mxu0 %vm253_vm2, %v202_v2  ;;  %1536 = vmatmul.mubr.msk.f32.gmra.mrb[54].mxu1 %vm253_vm2, %v236_v3 }
  0x82   : > { %1436 = vmatprep.mubr.msk.f32.mxu0 %vm1590_vm0, %v1591_v6  ;;  %1538 = vmatprep.mubr.msk.f32.mxu1 %vm1590_vm0, %v1591_v6 }
  0x85   : > { %1437 = vmatmul.mubr.msk.f32.gmra.mrb[56].mxu0 %vm253_vm2, %v203_v4  ;;  %1539 = vmatmul.mubr.msk.f32.gmra.mrb[56].mxu1 %vm253_vm2, %v237_v5 }
  0x86   : > { %1439 = vmatprep.mubr.msk.f32.mxu0 %vm1590_vm0, %v1591_v6  ;;  %1541 = vmatprep.mubr.msk.f32.mxu1 %vm1590_vm0, %v1591_v6 }
  0x89   : > { %1440 = vmatmul.mubr.msk.f32.gmra.mrb[58].mxu0 %vm253_vm2, %v204_v7  ;;  %1542 = vmatmul.mubr.msk.f32.gmra.mrb[58].mxu1 %vm253_vm2, %v238_v8 }
  0x8a   : > { %1442 = vmatprep.mubr.msk.f32.mxu0 %vm1590_vm0, %v1591_v6  ;;  %1544 = vmatprep.mubr.msk.f32.mxu1 %vm1590_vm0, %v1591_v6 }
  0x8d   : > { %1443 = vmatmul.mubr.msk.f32.gmra.mrb[60].mxu0 %vm253_vm2, %v205_v9  ;;  %1545 = vmatmul.mubr.msk.f32.gmra.mrb[60].mxu1 %vm253_vm2, %v239_v10 }
  0x8e   : > { %1445 = vmatprep.mubr.msk.f32.mxu0 %vm1590_vm0, %v1591_v6  ;;  %1547 = vmatprep.mubr.msk.f32.mxu1 %vm1590_vm0, %v1591_v6 }
  0x91   : > { %1446 = vmatmul.mubr.msk.f32.gmra.mrb[62].mxu0 %vm253_vm2, %v206_v11  ;;  %1548 = vmatmul.mubr.msk.f32.gmra.mrb[62].mxu1 %vm253_vm2, %v240_v12 }
  0x92   : > { %1448 = vmatprep.mubr.msk.f32.mxu0 %vm1590_vm0, %v1591_v6  ;;  %1550 = vmatprep.mubr.msk.f32.mxu1 %vm1590_vm0, %v1591_v6 }
  0x95   : > { %1449 = vmatmul.mubr.msk.f32.gmra.mrb[64].mxu0 %vm253_vm2, %v207_v13  ;;  %1551 = vmatmul.mubr.msk.f32.gmra.mrb[64].mxu1 %vm253_vm2, %v241_v14 }
  0x96   : > { %1451 = vmatprep.mubr.msk.f32.mxu0 %vm1590_vm0, %v1591_v6 }
  0x99   : > { %1452 = vmatmul.mubr.msk.f32.gmra.mrb[66].mxu0 %vm253_vm2, %v208_v15 }
  0xe8   : > { %v525_v23 = vpop.f32.mrb[0].mxu0  ;;  %v695_v24 = vpop.f32.mrb[0].mxu1 }
  0xe9   : > { %v526_v6 = vadd.f32 %v525_v23, %v1924_v21  ;;  %v1354_v25 = vpop.f32.mrb[1].mxu0  ;;  %v696_v26 = vadd.f32 %v695_v24, %v1924_v21  ;;  %v1456_v27 = vpop.f32.mrb[1].mxu1 }
  0xeb   : > { %vm859_vm3 = vcmp.ge.f32.partialorder %v526_v6, 0.0  ;;  %v930_v28 = vmul.f32 %v1926_v22, %v526_v6  ;;  %vm893_vm4 = vcmp.ge.f32.partialorder %v696_v26, 0.0  ;;  %v964_v29 = vmul.f32 %v1926_v22, %v696_v26 }
  0xec   : > { %v530_v30 = vpop.f32.mrb[2].mxu0  ;;  %v700_v31 = vpop.f32.mrb[2].mxu1 }
  0xed   : > { %v997_v32 = vsel %vm859_vm3, %v526_v6, %v930_v28  ;;  %v1031_v33 = vsel %vm893_vm4, %v696_v26, %v964_v29  ;;  %v531_v34 = vadd.f32 %v530_v30, %v1924_v21  ;;  %v1357_v35 = vpop.f32.mrb[3].mxu0  ;;  %v701_v36 = vadd.f32 %v700_v31, %v1924_v21  ;;  %v1459_v37 = vpop.f32.mrb[3].mxu1 }
  0xee   : > { %1064 = vst [vmem:[%s1935_s10] sm:$0xff] %v997_v32  ;;  %1098 = vst [vmem:[%s1935_s10 + $0x110] sm:$0xff] %v1031_v33 }
  0xef   : > { %vm860_vm5 = vcmp.ge.f32.partialorder %v531_v34, 0.0  ;;  %v931_v38 = vmul.f32 %v1926_v22, %v531_v34  ;;  %vm894_vm6 = vcmp.ge.f32.partialorder %v701_v36, 0.0  ;;  %v965_v39 = vmul.f32 %v1926_v22, %v701_v36 }
  0xf0   : > { %v535_v40 = vpop.f32.mrb[4].mxu0  ;;  %v705_v41 = vpop.f32.mrb[4].mxu1 }
  0xf1   : > { %v998_v42 = vsel %vm860_vm5, %v531_v34, %v931_v38  ;;  %v1032_v43 = vsel %vm894_vm6, %v701_v36, %v965_v39  ;;  %v536_v44 = vadd.f32 %v535_v40, %v1924_v21  ;;  %v1360_v45 = vpop.f32.mrb[5].mxu0  ;;  %v706_v46 = vadd.f32 %v705_v41, %v1924_v21  ;;  %v1462_v47 = vpop.f32.mrb[5].mxu1 }
  0xf2   : > { %1065 = vst [vmem:[%s1935_s10 + $0x8] sm:$0xff] %v998_v42  ;;  %1099 = vst [vmem:[%s1935_s10 + $0x118] sm:$0xff] %v1032_v43 }
  0xf3   : > { %vm861_vm7 = vcmp.ge.f32.partialorder %v536_v44, 0.0  ;;  %v932_v48 = vmul.f32 %v1926_v22, %v536_v44  ;;  %vm895_vm8 = vcmp.ge.f32.partialorder %v706_v46, 0.0  ;;  %v966_v49 = vmul.f32 %v1926_v22, %v706_v46 }
  0xf4   : > { %v540_v50 = vpop.f32.mrb[6].mxu0  ;;  %v710_v51 = vpop.f32.mrb[6].mxu1 }
  0xf5   : > { %v999_v52 = vsel %vm861_vm7, %v536_v44, %v932_v48  ;;  %v1033_v53 = vsel %vm895_vm8, %v706_v46, %v966_v49  ;;  %v541_v54 = vadd.f32 %v540_v50, %v1924_v21  ;;  %v1363_v55 = vpop.f32.mrb[7].mxu0  ;;  %v711_v56 = vadd.f32 %v710_v51, %v1924_v21  ;;  %v1465_v57 = vpop.f32.mrb[7].mxu1 }
  0xf6   : > { %1066 = vst [vmem:[%s1935_s10 + $0x10] sm:$0xff] %v999_v52  ;;  %1100 = vst [vmem:[%s1935_s10 + $0x120] sm:$0xff] %v1033_v53 }
  0xf7   : > { %vm862_vm9 = vcmp.ge.f32.partialorder %v541_v54, 0.0  ;;  %v933_v58 = vmul.f32 %v1926_v22, %v541_v54  ;;  %vm896_vm10 = vcmp.ge.f32.partialorder %v711_v56, 0.0  ;;  %v967_v59 = vmul.f32 %v1926_v22, %v711_v56 }
  0xf8   : > { %v545_v60 = vpop.f32.mrb[8].mxu0  ;;  %v715_v61 = vpop.f32.mrb[8].mxu1 }
  0xf9   : > { %v1000_v62 = vsel %vm862_vm9, %v541_v54, %v933_v58  ;;  %v1034_v63 = vsel %vm896_vm10, %v711_v56, %v967_v59  ;;  %v546_v0 = vadd.f32 %v545_v60, %v1924_v21  ;;  %v1366_v1 = vpop.f32.mrb[9].mxu0  ;;  %v716_v2 = vadd.f32 %v715_v61, %v1924_v21  ;;  %v1468_v3 = vpop.f32.mrb[9].mxu1 }
  0xfa   : > { %1067 = vst [vmem:[%s1935_s10 + $0x18] sm:$0xff] %v1000_v62  ;;  %1101 = vst [vmem:[%s1935_s10 + $0x128] sm:$0xff] %v1034_v63 }
  0xfb   : > { %vm863_vm11 = vcmp.ge.f32.partialorder %v546_v0, 0.0  ;;  %v934_v4 = vmul.f32 %v1926_v22, %v546_v0  ;;  %vm897_vm12 = vcmp.ge.f32.partialorder %v716_v2, 0.0  ;;  %v968_v5 = vmul.f32 %v1926_v22, %v716_v2 }
  0xfc   : > { %v550_v7 = vpop.f32.mrb[10].mxu0  ;;  %v720_v8 = vpop.f32.mrb[10].mxu1 }
  0xfd   : > { %v1001_v9 = vsel %vm863_vm11, %v546_v0, %v934_v4  ;;  %v1035_v10 = vsel %vm897_vm12, %v716_v2, %v968_v5  ;;  %v551_v11 = vadd.f32 %v550_v7, %v1924_v21  ;;  %v1369_v12 = vpop.f32.mrb[11].mxu0  ;;  %v721_v13 = vadd.f32 %v720_v8, %v1924_v21  ;;  %v1471_v14 = vpop.f32.mrb[11].mxu1 }
  0xfe   : > { %1068 = vst [vmem:[%s1935_s10 + $0x20] sm:$0xff] %v1001_v9  ;;  %1102 = vst [vmem:[%s1935_s10 + $0x130] sm:$0xff] %v1035_v10 }
  0xff   : > { %vm864_vm13 = vcmp.ge.f32.partialorder %v551_v11, 0.0  ;;  %v935_v15 = vmul.f32 %v1926_v22, %v551_v11  ;;  %vm898_vm14 = vcmp.ge.f32.partialorder %v721_v13, 0.0  ;;  %v969_v16 = vmul.f32 %v1926_v22, %v721_v13 }
 0x100   : > { %v555_v17 = vpop.f32.mrb[12].mxu0  ;;  %v725_v18 = vpop.f32.mrb[12].mxu1 }
 0x101   : > { %v1002_v19 = vsel %vm864_vm13, %v551_v11, %v935_v15  ;;  %v1036_v20 = vsel %vm898_vm14, %v721_v13, %v969_v16  ;;  %v556_v23 = vadd.f32 %v555_v17, %v1924_v21  ;;  %v1372_v24 = vpop.f32.mrb[13].mxu0  ;;  %v726_v6 = vadd.f32 %v725_v18, %v1924_v21  ;;  %v1474_v25 = vpop.f32.mrb[13].mxu1 }
 0x102   : > { %1069 = vst [vmem:[%s1935_s10 + $0x28] sm:$0xff] %v1002_v19  ;;  %1103 = vst [vmem:[%s1935_s10 + $0x138] sm:$0xff] %v1036_v20 }
 0x103   : > { %vm865_vm15 = vcmp.ge.f32.partialorder %v556_v23, 0.0  ;;  %v936_v26 = vmul.f32 %v1926_v22, %v556_v23  ;;  %vm899_vm0 = vcmp.ge.f32.partialorder %v726_v6, 0.0  ;;  %v970_v27 = vmul.f32 %v1926_v22, %v726_v6 }
 0x104   : > { %v560_v28 = vpop.f32.mrb[14].mxu0  ;;  %v730_v29 = vpop.f32.mrb[14].mxu1 }
 0x105   : > { %v1003_v30 = vsel %vm865_vm15, %v556_v23, %v936_v26  ;;  %v1037_v31 = vsel %vm899_vm0, %v726_v6, %v970_v27  ;;  %v561_v32 = vadd.f32 %v560_v28, %v1924_v21  ;;  %v1375_v33 = vpop.f32.mrb[15].mxu0  ;;  %v731_v34 = vadd.f32 %v730_v29, %v1924_v21  ;;  %v1477_v35 = vpop.f32.mrb[15].mxu1 }
 0x106   : > { %1070 = vst [vmem:[%s1935_s10 + $0x30] sm:$0xff] %v1003_v30  ;;  %1104 = vst [vmem:[%s1935_s10 + $0x140] sm:$0xff] %v1037_v31 }
 0x107   : > { %vm866_vm1 = vcmp.ge.f32.partialorder %v561_v32, 0.0  ;;  %v937_v36 = vmul.f32 %v1926_v22, %v561_v32  ;;  %vm900_vm2 = vcmp.ge.f32.partialorder %v731_v34, 0.0  ;;  %v971_v37 = vmul.f32 %v1926_v22, %v731_v34 }
 0x108   : > { %v565_v38 = vpop.f32.mrb[16].mxu0  ;;  %v735_v39 = vpop.f32.mrb[16].mxu1 }
 0x109   : > { %v1004_v40 = vsel %vm866_vm1, %v561_v32, %v937_v36  ;;  %v1038_v41 = vsel %vm900_vm2, %v731_v34, %v971_v37  ;;  %v566_v42 = vadd.f32 %v565_v38, %v1924_v21  ;;  %v1378_v43 = vpop.f32.mrb[17].mxu0  ;;  %v736_v44 = vadd.f32 %v735_v39, %v1924_v21  ;;  %v1480_v45 = vpop.f32.mrb[17].mxu1 }
 0x10a   : > { %1071 = vst [vmem:[%s1935_s10 + $0x38] sm:$0xff] %v1004_v40  ;;  %1105 = vst [vmem:[%s1935_s10 + $0x148] sm:$0xff] %v1038_v41 }
 0x10b   : > { %vm867_vm3 = vcmp.ge.f32.partialorder %v566_v42, 0.0  ;;  %v938_v46 = vmul.f32 %v1926_v22, %v566_v42  ;;  %vm901_vm4 = vcmp.ge.f32.partialorder %v736_v44, 0.0  ;;  %v972_v47 = vmul.f32 %v1926_v22, %v736_v44 }
 0x10c   : > { %v570_v48 = vpop.f32.mrb[18].mxu0  ;;  %v740_v49 = vpop.f32.mrb[18].mxu1 }
 0x10d   : > { %v1005_v50 = vsel %vm867_vm3, %v566_v42, %v938_v46  ;;  %v1039_v51 = vsel %vm901_vm4, %v736_v44, %v972_v47  ;;  %v571_v52 = vadd.f32 %v570_v48, %v1924_v21  ;;  %v1381_v53 = vpop.f32.mrb[19].mxu0  ;;  %v741_v54 = vadd.f32 %v740_v49, %v1924_v21  ;;  %v1483_v55 = vpop.f32.mrb[19].mxu1 }
 0x10e   : > { %1072 = vst [vmem:[%s1935_s10 + $0x40] sm:$0xff] %v1005_v50  ;;  %1106 = vst [vmem:[%s1935_s10 + $0x150] sm:$0xff] %v1039_v51 }
 0x10f   : > { %vm868_vm5 = vcmp.ge.f32.partialorder %v571_v52, 0.0  ;;  %v939_v56 = vmul.f32 %v1926_v22, %v571_v52  ;;  %vm902_vm6 = vcmp.ge.f32.partialorder %v741_v54, 0.0  ;;  %v973_v57 = vmul.f32 %v1926_v22, %v741_v54 }
 0x110   : > { %v575_v58 = vpop.f32.mrb[20].mxu0  ;;  %v745_v59 = vpop.f32.mrb[20].mxu1 }
 0x111   : > { %v1006_v60 = vsel %vm868_vm5, %v571_v52, %v939_v56  ;;  %v1040_v61 = vsel %vm902_vm6, %v741_v54, %v973_v57  ;;  %v576_v62 = vadd.f32 %v575_v58, %v1924_v21  ;;  %v1384_v63 = vpop.f32.mrb[21].mxu0  ;;  %v746_v0 = vadd.f32 %v745_v59, %v1924_v21  ;;  %v1486_v1 = vpop.f32.mrb[21].mxu1 }
 0x112   : > { %1073 = vst [vmem:[%s1935_s10 + $0x48] sm:$0xff] %v1006_v60  ;;  %1107 = vst [vmem:[%s1935_s10 + $0x158] sm:$0xff] %v1040_v61 }
 0x113   : > { %vm869_vm7 = vcmp.ge.f32.partialorder %v576_v62, 0.0  ;;  %v940_v2 = vmul.f32 %v1926_v22, %v576_v62  ;;  %vm903_vm8 = vcmp.ge.f32.partialorder %v746_v0, 0.0  ;;  %v974_v3 = vmul.f32 %v1926_v22, %v746_v0 }
 0x114   : > { %v580_v4 = vpop.f32.mrb[22].mxu0  ;;  %v750_v5 = vpop.f32.mrb[22].mxu1 }
 0x115   : > { %v1007_v7 = vsel %vm869_vm7, %v576_v62, %v940_v2  ;;  %v1041_v8 = vsel %vm903_vm8, %v746_v0, %v974_v3  ;;  %v581_v9 = vadd.f32 %v580_v4, %v1924_v21  ;;  %v1387_v10 = vpop.f32.mrb[23].mxu0  ;;  %v751_v11 = vadd.f32 %v750_v5, %v1924_v21  ;;  %v1489_v12 = vpop.f32.mrb[23].mxu1 }
 0x116   : > { %1074 = vst [vmem:[%s1935_s10 + $0x50] sm:$0xff] %v1007_v7  ;;  %1108 = vst [vmem:[%s1935_s10 + $0x160] sm:$0xff] %v1041_v8 }
 0x117   : > { %vm870_vm9 = vcmp.ge.f32.partialorder %v581_v9, 0.0  ;;  %v941_v13 = vmul.f32 %v1926_v22, %v581_v9  ;;  %vm904_vm10 = vcmp.ge.f32.partialorder %v751_v11, 0.0  ;;  %v975_v14 = vmul.f32 %v1926_v22, %v751_v11 }
 0x118   : > { %v585_v15 = vpop.f32.mrb[24].mxu0  ;;  %v755_v16 = vpop.f32.mrb[24].mxu1 }
 0x119   : > { %v1008_v17 = vsel %vm870_vm9, %v581_v9, %v941_v13  ;;  %v1042_v18 = vsel %vm904_vm10, %v751_v11, %v975_v14  ;;  %v586_v19 = vadd.f32 %v585_v15, %v1924_v21  ;;  %v1390_v20 = vpop.f32.mrb[25].mxu0  ;;  %v756_v23 = vadd.f32 %v755_v16, %v1924_v21  ;;  %v1492_v24 = vpop.f32.mrb[25].mxu1 }
 0x11a   : > { %1075 = vst [vmem:[%s1935_s10 + $0x58] sm:$0xff] %v1008_v17  ;;  %1109 = vst [vmem:[%s1935_s10 + $0x168] sm:$0xff] %v1042_v18 }
 0x11b   : > { %vm871_vm11 = vcmp.ge.f32.partialorder %v586_v19, 0.0  ;;  %v942_v6 = vmul.f32 %v1926_v22, %v586_v19  ;;  %vm905_vm12 = vcmp.ge.f32.partialorder %v756_v23, 0.0  ;;  %v976_v25 = vmul.f32 %v1926_v22, %v756_v23 }
 0x11c   : > { %v590_v26 = vpop.f32.mrb[26].mxu0  ;;  %v760_v27 = vpop.f32.mrb[26].mxu1 }
 0x11d   : > { %v1009_v28 = vsel %vm871_vm11, %v586_v19, %v942_v6  ;;  %v1043_v29 = vsel %vm905_vm12, %v756_v23, %v976_v25  ;;  %v591_v30 = vadd.f32 %v590_v26, %v1924_v21  ;;  %v1393_v31 = vpop.f32.mrb[27].mxu0  ;;  %v761_v32 = vadd.f32 %v760_v27, %v1924_v21  ;;  %v1495_v33 = vpop.f32.mrb[27].mxu1 }
 0x11e   : > { %1076 = vst [vmem:[%s1935_s10 + $0x60] sm:$0xff] %v1009_v28  ;;  %1110 = vst [vmem:[%s1935_s10 + $0x170] sm:$0xff] %v1043_v29 }
 0x11f   : > { %vm872_vm13 = vcmp.ge.f32.partialorder %v591_v30, 0.0  ;;  %v943_v34 = vmul.f32 %v1926_v22, %v591_v30  ;;  %vm906_vm14 = vcmp.ge.f32.partialorder %v761_v32, 0.0  ;;  %v977_v35 = vmul.f32 %v1926_v22, %v761_v32 }
 0x120   : > { %v595_v36 = vpop.f32.mrb[28].mxu0  ;;  %v765_v37 = vpop.f32.mrb[28].mxu1 }
 0x121   : > { %v1010_v38 = vsel %vm872_vm13, %v591_v30, %v943_v34  ;;  %v1044_v39 = vsel %vm906_vm14, %v761_v32, %v977_v35  ;;  %v596_v40 = vadd.f32 %v595_v36, %v1924_v21  ;;  %v1396_v41 = vpop.f32.mrb[29].mxu0  ;;  %v766_v42 = vadd.f32 %v765_v37, %v1924_v21  ;;  %v1498_v43 = vpop.f32.mrb[29].mxu1 }
 0x122   : > { %1077 = vst [vmem:[%s1935_s10 + $0x68] sm:$0xff] %v1010_v38  ;;  %1111 = vst [vmem:[%s1935_s10 + $0x178] sm:$0xff] %v1044_v39 }
 0x123   : > { %vm873_vm15 = vcmp.ge.f32.partialorder %v596_v40, 0.0  ;;  %v944_v44 = vmul.f32 %v1926_v22, %v596_v40  ;;  %vm907_vm0 = vcmp.ge.f32.partialorder %v766_v42, 0.0  ;;  %v978_v45 = vmul.f32 %v1926_v22, %v766_v42 }
 0x124   : > { %v600_v46 = vpop.f32.mrb[30].mxu0  ;;  %v770_v47 = vpop.f32.mrb[30].mxu1 }
 0x125   : > { %v1011_v48 = vsel %vm873_vm15, %v596_v40, %v944_v44  ;;  %v1045_v49 = vsel %vm907_vm0, %v766_v42, %v978_v45  ;;  %v601_v50 = vadd.f32 %v600_v46, %v1924_v21  ;;  %v1399_v51 = vpop.f32.mrb[31].mxu0  ;;  %v771_v52 = vadd.f32 %v770_v47, %v1924_v21  ;;  %v1501_v53 = vpop.f32.mrb[31].mxu1 }
 0x126   : > { %1078 = vst [vmem:[%s1935_s10 + $0x70] sm:$0xff] %v1011_v48  ;;  %1112 = vst [vmem:[%s1935_s10 + $0x180] sm:$0xff] %v1045_v49 }
 0x127   : > { %vm874_vm1 = vcmp.ge.f32.partialorder %v601_v50, 0.0  ;;  %v945_v54 = vmul.f32 %v1926_v22, %v601_v50  ;;  %vm908_vm2 = vcmp.ge.f32.partialorder %v771_v52, 0.0  ;;  %v979_v55 = vmul.f32 %v1926_v22, %v771_v52 }
 0x128   : > { %v605_v56 = vpop.f32.mrb[32].mxu0  ;;  %v775_v57 = vpop.f32.mrb[32].mxu1 }
 0x129   : > { %v1012_v58 = vsel %vm874_vm1, %v601_v50, %v945_v54  ;;  %v1046_v59 = vsel %vm908_vm2, %v771_v52, %v979_v55  ;;  %v606_v60 = vadd.f32 %v605_v56, %v1924_v21  ;;  %v1402_v61 = vpop.f32.mrb[33].mxu0  ;;  %v776_v62 = vadd.f32 %v775_v57, %v1924_v21  ;;  %v1504_v63 = vpop.f32.mrb[33].mxu1 }
 0x12a   : > { %1079 = vst [vmem:[%s1935_s10 + $0x78] sm:$0xff] %v1012_v58  ;;  %1113 = vst [vmem:[%s1935_s10 + $0x188] sm:$0xff] %v1046_v59 }
 0x12b   : > { %vm875_vm3 = vcmp.ge.f32.partialorder %v606_v60, 0.0  ;;  %v946_v0 = vmul.f32 %v1926_v22, %v606_v60  ;;  %vm909_vm4 = vcmp.ge.f32.partialorder %v776_v62, 0.0  ;;  %v980_v1 = vmul.f32 %v1926_v22, %v776_v62 }
 0x12c   : > { %v610_v2 = vpop.f32.mrb[34].mxu0  ;;  %v780_v3 = vpop.f32.mrb[34].mxu1 }
 0x12d   : > { %v1013_v4 = vsel %vm875_vm3, %v606_v60, %v946_v0  ;;  %v1047_v5 = vsel %vm909_vm4, %v776_v62, %v980_v1  ;;  %v611_v7 = vadd.f32 %v610_v2, %v1924_v21  ;;  %v1405_v8 = vpop.f32.mrb[35].mxu0  ;;  %v781_v9 = vadd.f32 %v780_v3, %v1924_v21  ;;  %v1507_v10 = vpop.f32.mrb[35].mxu1 }
 0x12e   : > { %1080 = vst [vmem:[%s1935_s10 + $0x80] sm:$0xff] %v1013_v4  ;;  %1114 = vst [vmem:[%s1935_s10 + $0x190] sm:$0xff] %v1047_v5 }
 0x12f   : > { %vm876_vm5 = vcmp.ge.f32.partialorder %v611_v7, 0.0  ;;  %v947_v11 = vmul.f32 %v1926_v22, %v611_v7  ;;  %vm910_vm6 = vcmp.ge.f32.partialorder %v781_v9, 0.0  ;;  %v981_v12 = vmul.f32 %v1926_v22, %v781_v9 }
 0x130   : > { %v615_v13 = vpop.f32.mrb[36].mxu0  ;;  %v785_v14 = vpop.f32.mrb[36].mxu1 }
 0x131   : > { %v1014_v15 = vsel %vm876_vm5, %v611_v7, %v947_v11  ;;  %v1048_v16 = vsel %vm910_vm6, %v781_v9, %v981_v12  ;;  %v616_v17 = vadd.f32 %v615_v13, %v1924_v21  ;;  %v1408_v18 = vpop.f32.mrb[37].mxu0  ;;  %v786_v19 = vadd.f32 %v785_v14, %v1924_v21  ;;  %v1510_v20 = vpop.f32.mrb[37].mxu1 }
 0x132   : > { %1081 = vst [vmem:[%s1935_s10 + $0x88] sm:$0xff] %v1014_v15  ;;  %1115 = vst [vmem:[%s1935_s10 + $0x198] sm:$0xff] %v1048_v16 }
 0x133   : > { %vm877_vm7 = vcmp.ge.f32.partialorder %v616_v17, 0.0  ;;  %v948_v23 = vmul.f32 %v1926_v22, %v616_v17  ;;  %vm911_vm8 = vcmp.ge.f32.partialorder %v786_v19, 0.0  ;;  %v982_v24 = vmul.f32 %v1926_v22, %v786_v19 }
 0x134   : > { %v620_v6 = vpop.f32.mrb[38].mxu0  ;;  %v790_v25 = vpop.f32.mrb[38].mxu1 }
 0x135   : > { %v1015_v26 = vsel %vm877_vm7, %v616_v17, %v948_v23  ;;  %v1049_v27 = vsel %vm911_vm8, %v786_v19, %v982_v24  ;;  %v621_v28 = vadd.f32 %v620_v6, %v1924_v21  ;;  %v1411_v29 = vpop.f32.mrb[39].mxu0  ;;  %v791_v30 = vadd.f32 %v790_v25, %v1924_v21  ;;  %v1513_v31 = vpop.f32.mrb[39].mxu1 }
 0x136   : > { %1082 = vst [vmem:[%s1935_s10 + $0x90] sm:$0xff] %v1015_v26  ;;  %1116 = vst [vmem:[%s1935_s10 + $0x1a0] sm:$0xff] %v1049_v27 }
 0x137   : > { %vm878_vm9 = vcmp.ge.f32.partialorder %v621_v28, 0.0  ;;  %v949_v32 = vmul.f32 %v1926_v22, %v621_v28  ;;  %vm912_vm10 = vcmp.ge.f32.partialorder %v791_v30, 0.0  ;;  %v983_v33 = vmul.f32 %v1926_v22, %v791_v30 }
 0x138   : > { %v625_v34 = vpop.f32.mrb[40].mxu0  ;;  %v795_v35 = vpop.f32.mrb[40].mxu1 }
 0x139   : > { %v1016_v36 = vsel %vm878_vm9, %v621_v28, %v949_v32  ;;  %v1050_v37 = vsel %vm912_vm10, %v791_v30, %v983_v33  ;;  %v626_v38 = vadd.f32 %v625_v34, %v1924_v21  ;;  %v1414_v39 = vpop.f32.mrb[41].mxu0  ;;  %v796_v40 = vadd.f32 %v795_v35, %v1924_v21  ;;  %v1516_v41 = vpop.f32.mrb[41].mxu1 }
 0x13a   : > { %1083 = vst [vmem:[%s1935_s10 + $0x98] sm:$0xff] %v1016_v36  ;;  %1117 = vst [vmem:[%s1935_s10 + $0x1a8] sm:$0xff] %v1050_v37 }
 0x13b   : > { %vm879_vm11 = vcmp.ge.f32.partialorder %v626_v38, 0.0  ;;  %v950_v42 = vmul.f32 %v1926_v22, %v626_v38  ;;  %vm913_vm12 = vcmp.ge.f32.partialorder %v796_v40, 0.0  ;;  %v984_v43 = vmul.f32 %v1926_v22, %v796_v40 }
 0x13c   : > { %v630_v44 = vpop.f32.mrb[42].mxu0  ;;  %v800_v45 = vpop.f32.mrb[42].mxu1 }
 0x13d   : > { %v1017_v46 = vsel %vm879_vm11, %v626_v38, %v950_v42  ;;  %v1051_v47 = vsel %vm913_vm12, %v796_v40, %v984_v43  ;;  %v631_v48 = vadd.f32 %v630_v44, %v1924_v21  ;;  %v1417_v49 = vpop.f32.mrb[43].mxu0  ;;  %v801_v50 = vadd.f32 %v800_v45, %v1924_v21  ;;  %v1519_v51 = vpop.f32.mrb[43].mxu1 }
 0x13e   : > { %1084 = vst [vmem:[%s1935_s10 + $0xa0] sm:$0xff] %v1017_v46  ;;  %1118 = vst [vmem:[%s1935_s10 + $0x1b0] sm:$0xff] %v1051_v47 }
 0x13f   : > { %vm880_vm13 = vcmp.ge.f32.partialorder %v631_v48, 0.0  ;;  %v951_v52 = vmul.f32 %v1926_v22, %v631_v48  ;;  %vm914_vm14 = vcmp.ge.f32.partialorder %v801_v50, 0.0  ;;  %v985_v53 = vmul.f32 %v1926_v22, %v801_v50 }
 0x140   : > { %v635_v54 = vpop.f32.mrb[44].mxu0  ;;  %v805_v55 = vpop.f32.mrb[44].mxu1 }
 0x141   : > { %v1018_v56 = vsel %vm880_vm13, %v631_v48, %v951_v52  ;;  %v1052_v57 = vsel %vm914_vm14, %v801_v50, %v985_v53  ;;  %v636_v58 = vadd.f32 %v635_v54, %v1924_v21  ;;  %v1420_v59 = vpop.f32.mrb[45].mxu0  ;;  %v806_v60 = vadd.f32 %v805_v55, %v1924_v21  ;;  %v1522_v61 = vpop.f32.mrb[45].mxu1 }
 0x142   : > { %1085 = vst [vmem:[%s1935_s10 + $0xa8] sm:$0xff] %v1018_v56  ;;  %1119 = vst [vmem:[%s1935_s10 + $0x1b8] sm:$0xff] %v1052_v57 }
 0x143   : > { %vm881_vm15 = vcmp.ge.f32.partialorder %v636_v58, 0.0  ;;  %v952_v62 = vmul.f32 %v1926_v22, %v636_v58  ;;  %vm915_vm0 = vcmp.ge.f32.partialorder %v806_v60, 0.0  ;;  %v986_v63 = vmul.f32 %v1926_v22, %v806_v60 }
 0x144   : > { %v640_v0 = vpop.f32.mrb[46].mxu0  ;;  %v810_v1 = vpop.f32.mrb[46].mxu1 }
 0x145   : > { %v1019_v2 = vsel %vm881_vm15, %v636_v58, %v952_v62  ;;  %v1053_v3 = vsel %vm915_vm0, %v806_v60, %v986_v63  ;;  %v641_v4 = vadd.f32 %v640_v0, %v1924_v21  ;;  %v1423_v5 = vpop.f32.mrb[47].mxu0  ;;  %v811_v7 = vadd.f32 %v810_v1, %v1924_v21  ;;  %v1525_v8 = vpop.f32.mrb[47].mxu1 }
 0x146   : > { %1086 = vst [vmem:[%s1935_s10 + $0xb0] sm:$0xff] %v1019_v2  ;;  %1120 = vst [vmem:[%s1935_s10 + $0x1c0] sm:$0xff] %v1053_v3 }
 0x147   : > { %vm882_vm1 = vcmp.ge.f32.partialorder %v641_v4, 0.0  ;;  %v953_v9 = vmul.f32 %v1926_v22, %v641_v4  ;;  %vm916_vm2 = vcmp.ge.f32.partialorder %v811_v7, 0.0  ;;  %v987_v10 = vmul.f32 %v1926_v22, %v811_v7 }
 0x148   : > { %v645_v11 = vpop.f32.mrb[48].mxu0  ;;  %v815_v12 = vpop.f32.mrb[48].mxu1 }
 0x149   : > { %v1020_v13 = vsel %vm882_vm1, %v641_v4, %v953_v9  ;;  %v1054_v14 = vsel %vm916_vm2, %v811_v7, %v987_v10  ;;  %v646_v15 = vadd.f32 %v645_v11, %v1924_v21  ;;  %v1426_v16 = vpop.f32.mrb[49].mxu0  ;;  %v816_v17 = vadd.f32 %v815_v12, %v1924_v21  ;;  %v1528_v18 = vpop.f32.mrb[49].mxu1 }
 0x14a   : > { %1087 = vst [vmem:[%s1935_s10 + $0xb8] sm:$0xff] %v1020_v13  ;;  %1121 = vst [vmem:[%s1935_s10 + $0x1c8] sm:$0xff] %v1054_v14 }
 0x14b   : > { %vm883_vm3 = vcmp.ge.f32.partialorder %v646_v15, 0.0  ;;  %v954_v19 = vmul.f32 %v1926_v22, %v646_v15  ;;  %vm917_vm4 = vcmp.ge.f32.partialorder %v816_v17, 0.0  ;;  %v988_v20 = vmul.f32 %v1926_v22, %v816_v17 }
 0x14c   : > { %v650_v23 = vpop.f32.mrb[50].mxu0  ;;  %v820_v24 = vpop.f32.mrb[50].mxu1 }
 0x14d   : > { %v1021_v6 = vsel %vm883_vm3, %v646_v15, %v954_v19  ;;  %v1055_v25 = vsel %vm917_vm4, %v816_v17, %v988_v20  ;;  %v651_v26 = vadd.f32 %v650_v23, %v1924_v21  ;;  %v1429_v27 = vpop.f32.mrb[51].mxu0  ;;  %v821_v28 = vadd.f32 %v820_v24, %v1924_v21  ;;  %v1531_v29 = vpop.f32.mrb[51].mxu1 }
 0x14e   : > { %1088 = vst [vmem:[%s1935_s10 + $0xc0] sm:$0xff] %v1021_v6  ;;  %1122 = vst [vmem:[%s1935_s10 + $0x1d0] sm:$0xff] %v1055_v25 }
 0x14f   : > { %vm884_vm5 = vcmp.ge.f32.partialorder %v651_v26, 0.0  ;;  %v955_v30 = vmul.f32 %v1926_v22, %v651_v26  ;;  %vm918_vm6 = vcmp.ge.f32.partialorder %v821_v28, 0.0  ;;  %v989_v31 = vmul.f32 %v1926_v22, %v821_v28 }
 0x150   : > { %v655_v32 = vpop.f32.mrb[52].mxu0  ;;  %v825_v33 = vpop.f32.mrb[52].mxu1 }
 0x151   : > { %v1022_v34 = vsel %vm884_vm5, %v651_v26, %v955_v30  ;;  %v1056_v35 = vsel %vm918_vm6, %v821_v28, %v989_v31  ;;  %v656_v36 = vadd.f32 %v655_v32, %v1924_v21  ;;  %v1432_v37 = vpop.f32.mrb[53].mxu0  ;;  %v826_v38 = vadd.f32 %v825_v33, %v1924_v21  ;;  %v1534_v39 = vpop.f32.mrb[53].mxu1 }
 0x152   : > { %1089 = vst [vmem:[%s1935_s10 + $0xc8] sm:$0xff] %v1022_v34  ;;  %1123 = vst [vmem:[%s1935_s10 + $0x1d8] sm:$0xff] %v1056_v35 }
 0x153   : > { %vm885_vm7 = vcmp.ge.f32.partialorder %v656_v36, 0.0  ;;  %v956_v40 = vmul.f32 %v1926_v22, %v656_v36  ;;  %vm919_vm8 = vcmp.ge.f32.partialorder %v826_v38, 0.0  ;;  %v990_v41 = vmul.f32 %v1926_v22, %v826_v38 }
 0x154   : > { %v660_v42 = vpop.f32.mrb[54].mxu0  ;;  %v830_v43 = vpop.f32.mrb[54].mxu1 }
 0x155   : > { %v1023_v44 = vsel %vm885_vm7, %v656_v36, %v956_v40  ;;  %v1057_v45 = vsel %vm919_vm8, %v826_v38, %v990_v41  ;;  %v661_v46 = vadd.f32 %v660_v42, %v1924_v21  ;;  %v1435_v47 = vpop.f32.mrb[55].mxu0  ;;  %v831_v48 = vadd.f32 %v830_v43, %v1924_v21  ;;  %v1537_v49 = vpop.f32.mrb[55].mxu1 }
 0x156   : > { %1090 = vst [vmem:[%s1935_s10 + $0xd0] sm:$0xff] %v1023_v44  ;;  %1124 = vst [vmem:[%s1935_s10 + $0x1e0] sm:$0xff] %v1057_v45 }
 0x157   : > { %vm886_vm9 = vcmp.ge.f32.partialorder %v661_v46, 0.0  ;;  %v957_v50 = vmul.f32 %v1926_v22, %v661_v46  ;;  %vm920_vm10 = vcmp.ge.f32.partialorder %v831_v48, 0.0  ;;  %v991_v51 = vmul.f32 %v1926_v22, %v831_v48 }
 0x158   : > { %v665_v52 = vpop.f32.mrb[56].mxu0  ;;  %v835_v53 = vpop.f32.mrb[56].mxu1 }
 0x159   : > { %v1024_v54 = vsel %vm886_vm9, %v661_v46, %v957_v50  ;;  %v1058_v55 = vsel %vm920_vm10, %v831_v48, %v991_v51  ;;  %v666_v56 = vadd.f32 %v665_v52, %v1924_v21  ;;  %v1438_v57 = vpop.f32.mrb[57].mxu0  ;;  %v836_v58 = vadd.f32 %v835_v53, %v1924_v21  ;;  %v1540_v59 = vpop.f32.mrb[57].mxu1 }
 0x15a   : > { %1091 = vst [vmem:[%s1935_s10 + $0xd8] sm:$0xff] %v1024_v54  ;;  %1125 = vst [vmem:[%s1935_s10 + $0x1e8] sm:$0xff] %v1058_v55 }
 0x15b   : > { %vm887_vm11 = vcmp.ge.f32.partialorder %v666_v56, 0.0  ;;  %v958_v60 = vmul.f32 %v1926_v22, %v666_v56  ;;  %vm921_vm12 = vcmp.ge.f32.partialorder %v836_v58, 0.0  ;;  %v992_v61 = vmul.f32 %v1926_v22, %v836_v58 }
 0x15c   : > { %v670_v62 = vpop.f32.mrb[58].mxu0  ;;  %v840_v63 = vpop.f32.mrb[58].mxu1 }
 0x15d   : > { %v1025_v0 = vsel %vm887_vm11, %v666_v56, %v958_v60  ;;  %v1059_v1 = vsel %vm921_vm12, %v836_v58, %v992_v61  ;;  %v671_v2 = vadd.f32 %v670_v62, %v1924_v21  ;;  %v1441_v3 = vpop.f32.mrb[59].mxu0  ;;  %v841_v4 = vadd.f32 %v840_v63, %v1924_v21  ;;  %v1543_v5 = vpop.f32.mrb[59].mxu1 }
 0x15e   : > { %1092 = vst [vmem:[%s1935_s10 + $0xe0] sm:$0xff] %v1025_v0  ;;  %1126 = vst [vmem:[%s1935_s10 + $0x1f0] sm:$0xff] %v1059_v1 }
 0x15f   : > { %vm888_vm13 = vcmp.ge.f32.partialorder %v671_v2, 0.0  ;;  %v959_v7 = vmul.f32 %v1926_v22, %v671_v2  ;;  %vm922_vm14 = vcmp.ge.f32.partialorder %v841_v4, 0.0  ;;  %v993_v8 = vmul.f32 %v1926_v22, %v841_v4 }
 0x160   : > { %v675_v9 = vpop.f32.mrb[60].mxu0  ;;  %v845_v10 = vpop.f32.mrb[60].mxu1 }
 0x161   : > { %v1026_v11 = vsel %vm888_vm13, %v671_v2, %v959_v7  ;;  %v1060_v12 = vsel %vm922_vm14, %v841_v4, %v993_v8  ;;  %v676_v13 = vadd.f32 %v675_v9, %v1924_v21  ;;  %v1444_v14 = vpop.f32.mrb[61].mxu0  ;;  %v846_v15 = vadd.f32 %v845_v10, %v1924_v21  ;;  %v1546_v16 = vpop.f32.mrb[61].mxu1 }
 0x162   : > { %1093 = vst [vmem:[%s1935_s10 + $0xe8] sm:$0xff] %v1026_v11  ;;  %1127 = vst [vmem:[%s1935_s10 + $0x1f8] sm:$0xff] %v1060_v12 }
 0x163   : > { %vm889_vm15 = vcmp.ge.f32.partialorder %v676_v13, 0.0  ;;  %v960_v17 = vmul.f32 %v1926_v22, %v676_v13  ;;  %vm923_vm0 = vcmp.ge.f32.partialorder %v846_v15, 0.0  ;;  %v994_v18 = vmul.f32 %v1926_v22, %v846_v15 }
 0x164   : > { %v680_v19 = vpop.f32.mrb[62].mxu0  ;;  %v850_v20 = vpop.f32.mrb[62].mxu1 }
 0x165   : > { %v1027_v23 = vsel %vm889_vm15, %v676_v13, %v960_v17  ;;  %v1061_v24 = vsel %vm923_vm0, %v846_v15, %v994_v18  ;;  %v681_v6 = vadd.f32 %v680_v19, %v1924_v21  ;;  %v1447_v25 = vpop.f32.mrb[63].mxu0  ;;  %v851_v26 = vadd.f32 %v850_v20, %v1924_v21  ;;  %v1549_v27 = vpop.f32.mrb[63].mxu1 }
 0x166   : > { %1094 = vst [vmem:[%s1935_s10 + $0xf0] sm:$0xff] %v1027_v23  ;;  %1128 = vst [vmem:[%s1935_s10 + $0x200] sm:$0xff] %v1061_v24 }
 0x167   : > { %vm890_vm1 = vcmp.ge.f32.partialorder %v681_v6, 0.0  ;;  %v961_v28 = vmul.f32 %v1926_v22, %v681_v6  ;;  %vm924_vm2 = vcmp.ge.f32.partialorder %v851_v26, 0.0  ;;  %v995_v29 = vmul.f32 %v1926_v22, %v851_v26 }
 0x168   : > { %v685_v30 = vpop.f32.mrb[64].mxu0  ;;  %v855_v31 = vpop.f32.mrb[64].mxu1 }
 0x169   : > { %v1028_v32 = vsel %vm890_vm1, %v681_v6, %v961_v28  ;;  %v1062_v33 = vsel %vm924_vm2, %v851_v26, %v995_v29  ;;  %v686_v34 = vadd.f32 %v685_v30, %v1924_v21  ;;  %v1450_v35 = vpop.f32.mrb[65].mxu0  ;;  %v856_v36 = vadd.f32 %v855_v31, %v1924_v21  ;;  %v1552_v37 = vpop.f32.mrb[65].mxu1 }
 0x16a   : > { %1095 = vst [vmem:[%s1935_s10 + $0xf8] sm:$0xff] %v1028_v32  ;;  %1129 = vst [vmem:[%s1935_s10 + $0x208] sm:$0xff] %v1062_v33 }
 0x16b   : > { %vm891_vm3 = vcmp.ge.f32.partialorder %v686_v34, 0.0  ;;  %v962_v38 = vmul.f32 %v1926_v22, %v686_v34  ;;  %vm925_vm4 = vcmp.ge.f32.partialorder %v856_v36, 0.0  ;;  %v996_v39 = vmul.f32 %v1926_v22, %v856_v36 }
 0x16c   : > { %v690_v40 = vpop.f32.mrb[66].mxu0 }
 0x16d   : > { %v1029_v41 = vsel %vm891_vm3, %v686_v34, %v962_v38  ;;  %v1063_v42 = vsel %vm925_vm4, %v856_v36, %v996_v39  ;;  %v691_v43 = vadd.f32 %v690_v40, %v1924_v21  ;;  %v1453_v44 = vpop.f32.mrb[67].mxu0 }
 0x16e   : > { %1096 = vst [vmem:[%s1935_s10 + $0x100] sm:$0xff] %v1029_v41  ;;  %1130 = vst [vmem:[%s1935_s10 + $0x210] sm:$0xff] %v1063_v42 }
 0x16f   : > { %vm892_vm5 = vcmp.ge.f32.partialorder %v691_v43, 0.0  ;;  %v963_v45 = vmul.f32 %v1926_v22, %v691_v43 }
 0x171   : > { %v1030_v46 = vsel %vm892_vm5, %v691_v43, %v963_v45 }
 0x172   : > { %1097 = vst [vmem:[%s1935_s10 + $0x108] sm:$0xff] %v1030_v46 }
 0x173 PF: > { %s13_s12 = sadd.s32 1, %s1587_s12  }
 0x174   : > { %p10_p4 = scmp.ge.s32.totalorder %s13_s12, 4  }
 0x176   :  { %12 = sbr.rel (!%p10_p4) target bundleno = 1 (0x1), region = 62 }

// kernel: _lambda_.5
= control target key start
LH: loop header
LB: loop body
LE: loop exit
PB: predicated region body
PF: predicated region fallthrough
CT: control target
= control target key end

     0   :  { %v622_v0 = vmov 0.0|0.0   ;;  %vm99_vm0 = vcmask 130048   ;;  %s1094_s1 = inlined_call_operand.vmem [shape: f32[144,128], index: 1, kind: input, shape index: {}]   ;;  %s1095_s0 = inlined_call_operand.vmem [shape: f32[248,144], index: 0, kind: input, shape index: {}]   ;;  %s1096_s2 = inlined_call_operand.vmem [shape: f32[2,128], index: 2, kind: input, shape index: {}]   ;;  %s1097_s3 = inlined_call_operand.vmem [shape: f32[248,128], index: 3, kind: output, shape index: {}]  }
   0x1   :  { %576 = vmatprep.subr.bf16.mxu0 %v622_v0  ;;  %v77_v1 = vld [vmem:[%s1094_s1] sm:$0xff]  ;;  %v78_v2 = vld [vmem:[%s1094_s1 + $0x8] sm:$0xff]  ;;  %603 = vmatprep.subr.bf16.mxu1 %v622_v0  ;;  %v79_v3 = vld [vmem:[%s1094_s1 + $0x10] sm:$0xff] }
   0x2   :  { %v577_v4 = vpack.c.bf16 %v78_v2, %v77_v1  ;;  %v80_v5 = vld [vmem:[%s1094_s1 + $0x18] sm:$0xff]  ;;  %v81_v7 = vld [vmem:[%s1094_s1 + $0x20] sm:$0xff]  ;;  %v82_v8 = vld [vmem:[%s1094_s1 + $0x28] sm:$0xff] }
   0x3   :  { %v580_v6 = vpack.c.bf16 %v80_v5, %v79_v3  ;;  %v16_v9 = vld [vmem:[%s1095_s0 + $0x8] sm:$0xff]  ;;  %v583_v11 = vpack.c.bf16 %v82_v8, %v81_v7  ;;  %v83_v12 = vld [vmem:[%s1094_s1 + $0x30] sm:$0xff]  ;;  %v84_v13 = vld [vmem:[%s1094_s1 + $0x38] sm:$0xff] }
   0x4   :  { %578 = vmatpush1.bf16.msra.mxu0 %v577_v4  ;;  %612 = vmatpush1.bf16.msra.mxu1 %v577_v4  ;;  %v48_v10 = vld [vmem:[%s1095_s0 + $0x108] sm:$0xff]  ;;  %v586_v14 = vpack.c.bf16 %v84_v13, %v83_v12  ;;  %v85_v15 = vld [vmem:[%s1094_s1 + $0x40] sm:$0xff]  ;;  %v87_v18 = vld [vmem:[%s1094_s1 + $0x50] sm:$0xff] }
   0x5   :  { %579 = vmatprep.subr.bf16.mxu0 %v622_v0  ;;  %604 = vmatprep.subr.bf16.mxu1 %v622_v0  ;;  %v86_v16 = vld [vmem:[%s1094_s1 + $0x48] sm:$0xff]  ;;  %v88_v19 = vld [vmem:[%s1094_s1 + $0x58] sm:$0xff]  ;;  %v89_v21 = vld [vmem:[%s1094_s1 + $0x60] sm:$0xff] }
   0x6   :  { %545 = vmatprep.mubr.msk.f32.mxu0 %vm99_vm0, %v16_v9  ;;  %561 = vmatprep.mubr.msk.f32.mxu1 %vm99_vm0, %v48_v10  ;;  %v589_v17 = vpack.c.bf16 %v86_v16, %v85_v15  ;;  %v592_v20 = vpack.c.bf16 %v88_v19, %v87_v18  ;;  %v90_v22 = vld [vmem:[%s1094_s1 + $0x68] sm:$0xff]  ;;  %v91_v24 = vld [vmem:[%s1094_s1 + $0x70] sm:$0xff]  ;;  %v92_v25 = vld [vmem:[%s1094_s1 + $0x78] sm:$0xff] }
   0x7   :  { %v595_v23 = vpack.c.bf16 %v90_v22, %v89_v21  ;;  %v598_v26 = vpack.c.bf16 %v92_v25, %v91_v24  ;;  %v93_v27 = vld [vmem:[%s1094_s1 + $0x80] sm:$0xff]  ;;  %v94_v28 = vld [vmem:[%s1094_s1 + $0x88] sm:$0xff]  ;;  %v18_v32 = vld [vmem:[%s1095_s0 + $0x18] sm:$0xff] }
   0x8   :  { %581 = vmatpush1.bf16.msra.mxu0 %v580_v6  ;;  %613 = vmatpush1.bf16.msra.mxu1 %v580_v6  ;;  %v601_v29 = vpack.c.bf16 %v94_v28, %v93_v27  ;;  %v15_v30 = vld [vmem:[%s1095_s0] sm:$0xff]  ;;  %v50_v33 = vld [vmem:[%s1095_s0 + $0x118] sm:$0xff]  ;;  %v17_v34 = vld [vmem:[%s1095_s0 + $0x10] sm:$0xff] }
   0x9   :  { %582 = vmatprep.subr.bf16.mxu0 %v622_v0  ;;  %605 = vmatprep.subr.bf16.mxu1 %v622_v0  ;;  %v47_v31 = vld [vmem:[%s1095_s0 + $0x100] sm:$0xff]  ;;  %v49_v35 = vld [vmem:[%s1095_s0 + $0x110] sm:$0xff]  ;;  %v20_v36 = vld [vmem:[%s1095_s0 + $0x28] sm:$0xff] }
   0xa   :  { %v52_v37 = vld [vmem:[%s1095_s0 + $0x128] sm:$0xff]  ;;  %v19_v38 = vld [vmem:[%s1095_s0 + $0x20] sm:$0xff]  ;;  %v22_v40 = vld [vmem:[%s1095_s0 + $0x38] sm:$0xff] }
   0xb   :  { %v51_v39 = vld [vmem:[%s1095_s0 + $0x120] sm:$0xff]  ;;  %v54_v41 = vld [vmem:[%s1095_s0 + $0x138] sm:$0xff]  ;;  %v21_v42 = vld [vmem:[%s1095_s0 + $0x30] sm:$0xff] }
   0xc   :  { %584 = vmatpush1.bf16.msra.mxu0 %v583_v11  ;;  %614 = vmatpush1.bf16.msra.mxu1 %v583_v11  ;;  %v53_v43 = vld [vmem:[%s1095_s0 + $0x130] sm:$0xff]  ;;  %v24_v44 = vld [vmem:[%s1095_s0 + $0x48] sm:$0xff]  ;;  %v23_v46 = vld [vmem:[%s1095_s0 + $0x40] sm:$0xff] }
   0xd   :  { %585 = vmatprep.subr.bf16.mxu0 %v622_v0  ;;  %606 = vmatprep.subr.bf16.mxu1 %v622_v0  ;;  %v56_v45 = vld [vmem:[%s1095_s0 + $0x148] sm:$0xff]  ;;  %v55_v47 = vld [vmem:[%s1095_s0 + $0x140] sm:$0xff]  ;;  %v26_v48 = vld [vmem:[%s1095_s0 + $0x58] sm:$0xff] }
   0xe   :  { %v58_v49 = vld [vmem:[%s1095_s0 + $0x158] sm:$0xff]  ;;  %v25_v50 = vld [vmem:[%s1095_s0 + $0x50] sm:$0xff]  ;;  %v28_v52 = vld [vmem:[%s1095_s0 + $0x68] sm:$0xff] }
   0xf   :  { %v57_v51 = vld [vmem:[%s1095_s0 + $0x150] sm:$0xff]  ;;  %v60_v53 = vld [vmem:[%s1095_s0 + $0x168] sm:$0xff]  ;;  %v27_v54 = vld [vmem:[%s1095_s0 + $0x60] sm:$0xff] }
  0x10   :  { %587 = vmatpush1.bf16.msra.mxu0 %v586_v14  ;;  %615 = vmatpush1.bf16.msra.mxu1 %v586_v14  ;;  %v59_v55 = vld [vmem:[%s1095_s0 + $0x160] sm:$0xff]  ;;  %v30_v56 = vld [vmem:[%s1095_s0 + $0x78] sm:$0xff]  ;;  %v29_v58 = vld [vmem:[%s1095_s0 + $0x70] sm:$0xff] }
  0x11   :  { %588 = vmatprep.subr.bf16.mxu0 %v622_v0  ;;  %607 = vmatprep.subr.bf16.mxu1 %v622_v0  ;;  %v62_v57 = vld [vmem:[%s1095_s0 + $0x178] sm:$0xff]  ;;  %v61_v59 = vld [vmem:[%s1095_s0 + $0x170] sm:$0xff]  ;;  %v32_v60 = vld [vmem:[%s1095_s0 + $0x88] sm:$0xff] }
  0x12   :  { %v64_v61 = vld [vmem:[%s1095_s0 + $0x188] sm:$0xff]  ;;  %v31_v62 = vld [vmem:[%s1095_s0 + $0x80] sm:$0xff]  ;;  %v66_v1 = vld [vmem:[%s1095_s0 + $0x198] sm:$0xff] }
  0x13   :  { %v63_v63 = vld [vmem:[%s1095_s0 + $0x180] sm:$0xff]  ;;  %v33_v2 = vld [vmem:[%s1095_s0 + $0x90] sm:$0xff]  ;;  %v36_v4 = vld [vmem:[%s1095_s0 + $0xa8] sm:$0xff] }
  0x14   :  { %590 = vmatpush1.bf16.msra.mxu0 %v589_v17  ;;  %616 = vmatpush1.bf16.msra.mxu1 %v589_v17  ;;  %v65_v3 = vld [vmem:[%s1095_s0 + $0x190] sm:$0xff]  ;;  %v68_v5 = vld [vmem:[%s1095_s0 + $0x1a8] sm:$0xff]  ;;  %v35_v6 = vld [vmem:[%s1095_s0 + $0xa0] sm:$0xff] }
  0x15   :  { %591 = vmatprep.subr.bf16.mxu0 %v622_v0  ;;  %608 = vmatprep.subr.bf16.mxu1 %v622_v0  ;;  %v67_v7 = vld [vmem:[%s1095_s0 + $0x1a0] sm:$0xff]  ;;  %v38_v8 = vld [vmem:[%s1095_s0 + $0xb8] sm:$0xff]  ;;  %v37_v10 = vld [vmem:[%s1095_s0 + $0xb0] sm:$0xff] }
  0x16   :  { %v70_v9 = vld [vmem:[%s1095_s0 + $0x1b8] sm:$0xff]  ;;  %v69_v11 = vld [vmem:[%s1095_s0 + $0x1b0] sm:$0xff]  ;;  %v40_v12 = vld [vmem:[%s1095_s0 + $0xc8] sm:$0xff] }
  0x17   :  { %v72_v13 = vld [vmem:[%s1095_s0 + $0x1c8] sm:$0xff]  ;;  %v39_v14 = vld [vmem:[%s1095_s0 + $0xc0] sm:$0xff]  ;;  %v42_v16 = vld [vmem:[%s1095_s0 + $0xd8] sm:$0xff] }
  0x18   :  { %593 = vmatpush1.bf16.msra.mxu0 %v592_v20  ;;  %617 = vmatpush1.bf16.msra.mxu1 %v592_v20  ;;  %v71_v15 = vld [vmem:[%s1095_s0 + $0x1c0] sm:$0xff]  ;;  %v74_v17 = vld [vmem:[%s1095_s0 + $0x1d8] sm:$0xff]  ;;  %v41_v18 = vld [vmem:[%s1095_s0 + $0xd0] sm:$0xff] }
  0x19   :  { %594 = vmatprep.subr.bf16.mxu0 %v622_v0  ;;  %609 = vmatprep.subr.bf16.mxu1 %v622_v0  ;;  %v73_v19 = vld [vmem:[%s1095_s0 + $0x1d0] sm:$0xff]  ;;  %v44_v20 = vld [vmem:[%s1095_s0 + $0xe8] sm:$0xff]  ;;  %v43_v22 = vld [vmem:[%s1095_s0 + $0xe0] sm:$0xff] }
  0x1a   :  { %v76_v21 = vld [vmem:[%s1095_s0 + $0x1e8] sm:$0xff]  ;;  %v46_v24 = vld [vmem:[%s1095_s0 + $0xf8] sm:$0xff]  ;;  %v45_v25 = vld [vmem:[%s1095_s0 + $0xf0] sm:$0xff] }
  0x1c   :  { %596 = vmatpush1.bf16.msra.mxu0 %v595_v23  ;;  %618 = vmatpush1.bf16.msra.mxu1 %v595_v23  ;;  %v75_v23 = vld [vmem:[%s1095_s0 + $0x1e0] sm:$0xff] }
  0x1d   :  { %597 = vmatprep.subr.bf16.mxu0 %v622_v0  ;;  %610 = vmatprep.subr.bf16.mxu1 %v622_v0 }
  0x20   :  { %599 = vmatpush1.bf16.msra.mxu0 %v598_v26  ;;  %619 = vmatpush1.bf16.msra.mxu1 %v598_v26  ;;  %v95_v26 = vlaneseq }
  0x21   :  { %600 = vmatprep.subr.bf16.mxu0 %v622_v0  ;;  %611 = vmatprep.subr.bf16.mxu1 %v622_v0  ;;  %v34_v0 = vld [vmem:[%s1095_s0 + $0x98] sm:$0xff] }
  0x22   :  { %v96_v27 = vshrl.u32 %v95_v26, 7 }
  0x24   :  { %602 = vmatpush1.bf16.msra.mxu0 %v601_v29  ;;  %620 = vmatpush1.bf16.msra.mxu1 %v601_v29  ;;  %v97_v28 = vsub.s32 0, %v96_v27  ;;  %v14_v29 = vld [vmem:[%s1096_s2] sm:$0x3] }
  0x27   :  { %258 = vmatmul.mubr.f32.vlgmr.msra.gmra.mrb[0].mxu0 %v15_v30  ;;  %338 = vmatmul.mubr.f32.vlgmr.msra.gmra.mrb[0].mxu1 %v47_v31  ;;  %v446_v30 = vsub.s32 1, %v96_v27  ;;  %v935_v31 = vrot.slane %v14_v29, %v97_v28 }
  0x28   :  { %546 = vmatprep.mubr.msk.f32.mxu0 %vm99_vm0, %v18_v32  ;;  %562 = vmatprep.mubr.msk.f32.mxu1 %vm99_vm0, %v50_v33 }
  0x29   :  { %v937_v32 = vrot.slane %v14_v29, %v446_v30 }
  0x2b   :  { %263 = vmatmul.mubr.f32.gmra.mrb[2].mxu0 %v17_v34  ;;  %343 = vmatmul.mubr.f32.gmra.mrb[2].mxu1 %v49_v35 }
  0x2c   :  { %547 = vmatprep.mubr.msk.f32.mxu0 %vm99_vm0, %v20_v36  ;;  %563 = vmatprep.mubr.msk.f32.mxu1 %vm99_vm0, %v52_v37 }
  0x2f   :  { %268 = vmatmul.mubr.f32.gmra.mrb[4].mxu0 %v19_v38  ;;  %348 = vmatmul.mubr.f32.gmra.mrb[4].mxu1 %v51_v39 }
  0x30   :  { %548 = vmatprep.mubr.msk.f32.mxu0 %vm99_vm0, %v22_v40  ;;  %564 = vmatprep.mubr.msk.f32.mxu1 %vm99_vm0, %v54_v41 }
  0x33   :  { %273 = vmatmul.mubr.f32.gmra.mrb[6].mxu0 %v21_v42  ;;  %353 = vmatmul.mubr.f32.gmra.mrb[6].mxu1 %v53_v43 }
  0x34   :  { %549 = vmatprep.mubr.msk.f32.mxu0 %vm99_vm0, %v24_v44  ;;  %565 = vmatprep.mubr.msk.f32.mxu1 %vm99_vm0, %v56_v45 }
  0x37   :  { %278 = vmatmul.mubr.f32.gmra.mrb[8].mxu0 %v23_v46  ;;  %358 = vmatmul.mubr.f32.gmra.mrb[8].mxu1 %v55_v47 }
  0x38   :  { %550 = vmatprep.mubr.msk.f32.mxu0 %vm99_vm0, %v26_v48  ;;  %566 = vmatprep.mubr.msk.f32.mxu1 %vm99_vm0, %v58_v49 }
  0x3b   :  { %283 = vmatmul.mubr.f32.gmra.mrb[10].mxu0 %v25_v50  ;;  %363 = vmatmul.mubr.f32.gmra.mrb[10].mxu1 %v57_v51 }
  0x3c   :  { %551 = vmatprep.mubr.msk.f32.mxu0 %vm99_vm0, %v28_v52  ;;  %567 = vmatprep.mubr.msk.f32.mxu1 %vm99_vm0, %v60_v53 }
  0x3f   :  { %288 = vmatmul.mubr.f32.gmra.mrb[12].mxu0 %v27_v54  ;;  %368 = vmatmul.mubr.f32.gmra.mrb[12].mxu1 %v59_v55 }
  0x40   :  { %552 = vmatprep.mubr.msk.f32.mxu0 %vm99_vm0, %v30_v56  ;;  %568 = vmatprep.mubr.msk.f32.mxu1 %vm99_vm0, %v62_v57 }
  0x43   :  { %293 = vmatmul.mubr.f32.gmra.mrb[14].mxu0 %v29_v58  ;;  %373 = vmatmul.mubr.f32.gmra.mrb[14].mxu1 %v61_v59 }
  0x44   :  { %553 = vmatprep.mubr.msk.f32.mxu0 %vm99_vm0, %v32_v60  ;;  %569 = vmatprep.mubr.msk.f32.mxu1 %vm99_vm0, %v64_v61 }
  0x47   :  { %298 = vmatmul.mubr.f32.gmra.mrb[16].mxu0 %v31_v62  ;;  %378 = vmatmul.mubr.f32.gmra.mrb[16].mxu1 %v63_v63 }
  0x48   :  { %554 = vmatprep.mubr.msk.f32.mxu0 %vm99_vm0, %v34_v0  ;;  %570 = vmatprep.mubr.msk.f32.mxu1 %vm99_vm0, %v66_v1 }
  0x4b   :  { %303 = vmatmul.mubr.f32.gmra.mrb[18].mxu0 %v33_v2  ;;  %383 = vmatmul.mubr.f32.gmra.mrb[18].mxu1 %v65_v3 }
  0x4c   :  { %555 = vmatprep.mubr.msk.f32.mxu0 %vm99_vm0, %v36_v4  ;;  %571 = vmatprep.mubr.msk.f32.mxu1 %vm99_vm0, %v68_v5 }
  0x4f   :  { %308 = vmatmul.mubr.f32.gmra.mrb[20].mxu0 %v35_v6  ;;  %388 = vmatmul.mubr.f32.gmra.mrb[20].mxu1 %v67_v7 }
  0x50   :  { %556 = vmatprep.mubr.msk.f32.mxu0 %vm99_vm0, %v38_v8  ;;  %572 = vmatprep.mubr.msk.f32.mxu1 %vm99_vm0, %v70_v9 }
  0x53   :  { %313 = vmatmul.mubr.f32.gmra.mrb[22].mxu0 %v37_v10  ;;  %393 = vmatmul.mubr.f32.gmra.mrb[22].mxu1 %v69_v11 }
  0x54   :  { %557 = vmatprep.mubr.msk.f32.mxu0 %vm99_vm0, %v40_v12  ;;  %573 = vmatprep.mubr.msk.f32.mxu1 %vm99_vm0, %v72_v13 }
  0x57   :  { %318 = vmatmul.mubr.f32.gmra.mrb[24].mxu0 %v39_v14  ;;  %398 = vmatmul.mubr.f32.gmra.mrb[24].mxu1 %v71_v15 }
  0x58   :  { %558 = vmatprep.mubr.msk.f32.mxu0 %vm99_vm0, %v42_v16  ;;  %574 = vmatprep.mubr.msk.f32.mxu1 %vm99_vm0, %v74_v17 }
  0x5b   :  { %323 = vmatmul.mubr.f32.gmra.mrb[26].mxu0 %v41_v18  ;;  %403 = vmatmul.mubr.f32.gmra.mrb[26].mxu1 %v73_v19 }
  0x5c   :  { %559 = vmatprep.mubr.msk.f32.mxu0 %vm99_vm0, %v44_v20  ;;  %575 = vmatprep.mubr.msk.f32.mxu1 %vm99_vm0, %v76_v21 }
  0x5f   :  { %328 = vmatmul.mubr.f32.gmra.mrb[28].mxu0 %v43_v22  ;;  %408 = vmatmul.mubr.f32.gmra.mrb[28].mxu1 %v75_v23 }
  0x60   :  { %560 = vmatprep.mubr.msk.f32.mxu0 %vm99_vm0, %v46_v24 }
  0x63   :  { %333 = vmatmul.mubr.f32.gmra.mrb[30].mxu0 %v45_v25 }
  0xfa   :  { %v259_v33 = vpop.f32.mrb[0].mxu0  ;;  %v339_v34 = vpop.f32.mrb[0].mxu1 }
  0xfb   :  { %v260_v35 = vadd.f32 %v259_v33, %v935_v31  ;;  %v261_v36 = vpop.f32.mrb[1].mxu0  ;;  %v340_v37 = vadd.f32 %v339_v34, %v935_v31  ;;  %v341_v38 = vpop.f32.mrb[1].mxu1 }
  0xfd   :  { %vm413_vm1 = vcmp.ge.f32.partialorder %v260_v35, 0.0  ;;  %v448_v39 = vmul.f32 %v937_v32, %v260_v35  ;;  %vm429_vm2 = vcmp.ge.f32.partialorder %v340_v37, 0.0  ;;  %v464_v40 = vmul.f32 %v937_v32, %v340_v37 }
  0xfe   :  { %v264_v41 = vpop.f32.mrb[2].mxu0  ;;  %v344_v42 = vpop.f32.mrb[2].mxu1 }
  0xff   :  { %v479_v43 = vsel %vm413_vm1, %v260_v35, %v448_v39  ;;  %v495_v44 = vsel %vm429_vm2, %v340_v37, %v464_v40  ;;  %v265_v45 = vadd.f32 %v264_v41, %v935_v31  ;;  %v266_v46 = vpop.f32.mrb[3].mxu0  ;;  %v345_v47 = vadd.f32 %v344_v42, %v935_v31  ;;  %v346_v48 = vpop.f32.mrb[3].mxu1 }
 0x100   :  { %510 = vst [vmem:[%s1097_s3] sm:$0xff] %v479_v43  ;;  %526 = vst [vmem:[%s1097_s3 + $0x80] sm:$0xff] %v495_v44 }
 0x101   :  { %vm414_vm3 = vcmp.ge.f32.partialorder %v265_v45, 0.0  ;;  %v449_v49 = vmul.f32 %v937_v32, %v265_v45  ;;  %vm430_vm4 = vcmp.ge.f32.partialorder %v345_v47, 0.0  ;;  %v465_v50 = vmul.f32 %v937_v32, %v345_v47 }
 0x102   :  { %v269_v51 = vpop.f32.mrb[4].mxu0  ;;  %v349_v52 = vpop.f32.mrb[4].mxu1 }
 0x103   :  { %v480_v53 = vsel %vm414_vm3, %v265_v45, %v449_v49  ;;  %v496_v54 = vsel %vm430_vm4, %v345_v47, %v465_v50  ;;  %v270_v55 = vadd.f32 %v269_v51, %v935_v31  ;;  %v271_v56 = vpop.f32.mrb[5].mxu0  ;;  %v350_v57 = vadd.f32 %v349_v52, %v935_v31  ;;  %v351_v58 = vpop.f32.mrb[5].mxu1 }
 0x104   :  { %511 = vst [vmem:[%s1097_s3 + $0x8] sm:$0xff] %v480_v53  ;;  %527 = vst [vmem:[%s1097_s3 + $0x88] sm:$0xff] %v496_v54 }
 0x105   :  { %vm415_vm5 = vcmp.ge.f32.partialorder %v270_v55, 0.0  ;;  %v450_v59 = vmul.f32 %v937_v32, %v270_v55  ;;  %vm431_vm6 = vcmp.ge.f32.partialorder %v350_v57, 0.0  ;;  %v466_v60 = vmul.f32 %v937_v32, %v350_v57 }
 0x106   :  { %v274_v61 = vpop.f32.mrb[6].mxu0  ;;  %v354_v62 = vpop.f32.mrb[6].mxu1 }
 0x107   :  { %v481_v63 = vsel %vm415_vm5, %v270_v55, %v450_v59  ;;  %v497_v0 = vsel %vm431_vm6, %v350_v57, %v466_v60  ;;  %v275_v1 = vadd.f32 %v274_v61, %v935_v31  ;;  %v276_v2 = vpop.f32.mrb[7].mxu0  ;;  %v355_v3 = vadd.f32 %v354_v62, %v935_v31  ;;  %v356_v4 = vpop.f32.mrb[7].mxu1 }
 0x108   :  { %512 = vst [vmem:[%s1097_s3 + $0x10] sm:$0xff] %v481_v63  ;;  %528 = vst [vmem:[%s1097_s3 + $0x90] sm:$0xff] %v497_v0 }
 0x109   :  { %vm416_vm7 = vcmp.ge.f32.partialorder %v275_v1, 0.0  ;;  %v451_v5 = vmul.f32 %v937_v32, %v275_v1  ;;  %vm432_vm8 = vcmp.ge.f32.partialorder %v355_v3, 0.0  ;;  %v467_v6 = vmul.f32 %v937_v32, %v355_v3 }
 0x10a   :  { %v279_v7 = vpop.f32.mrb[8].mxu0  ;;  %v359_v8 = vpop.f32.mrb[8].mxu1 }
 0x10b   :  { %v482_v9 = vsel %vm416_vm7, %v275_v1, %v451_v5  ;;  %v498_v10 = vsel %vm432_vm8, %v355_v3, %v467_v6  ;;  %v280_v11 = vadd.f32 %v279_v7, %v935_v31  ;;  %v281_v12 = vpop.f32.mrb[9].mxu0  ;;  %v360_v13 = vadd.f32 %v359_v8, %v935_v31  ;;  %v361_v14 = vpop.f32.mrb[9].mxu1 }
 0x10c   :  { %513 = vst [vmem:[%s1097_s3 + $0x18] sm:$0xff] %v482_v9  ;;  %529 = vst [vmem:[%s1097_s3 + $0x98] sm:$0xff] %v498_v10 }
 0x10d   :  { %vm417_vm9 = vcmp.ge.f32.partialorder %v280_v11, 0.0  ;;  %v452_v15 = vmul.f32 %v937_v32, %v280_v11  ;;  %vm433_vm10 = vcmp.ge.f32.partialorder %v360_v13, 0.0  ;;  %v468_v16 = vmul.f32 %v937_v32, %v360_v13 }
 0x10e   :  { %v284_v17 = vpop.f32.mrb[10].mxu0  ;;  %v364_v18 = vpop.f32.mrb[10].mxu1 }
 0x10f   :  { %v483_v19 = vsel %vm417_vm9, %v280_v11, %v452_v15  ;;  %v499_v20 = vsel %vm433_vm10, %v360_v13, %v468_v16  ;;  %v285_v21 = vadd.f32 %v284_v17, %v935_v31  ;;  %v286_v22 = vpop.f32.mrb[11].mxu0  ;;  %v365_v23 = vadd.f32 %v364_v18, %v935_v31  ;;  %v366_v24 = vpop.f32.mrb[11].mxu1 }
 0x110   :  { %514 = vst [vmem:[%s1097_s3 + $0x20] sm:$0xff] %v483_v19  ;;  %530 = vst [vmem:[%s1097_s3 + $0xa0] sm:$0xff] %v499_v20 }
 0x111   :  { %vm418_vm11 = vcmp.ge.f32.partialorder %v285_v21, 0.0  ;;  %v453_v25 = vmul.f32 %v937_v32, %v285_v21  ;;  %vm434_vm12 = vcmp.ge.f32.partialorder %v365_v23, 0.0  ;;  %v469_v26 = vmul.f32 %v937_v32, %v365_v23 }
 0x112   :  { %v289_v27 = vpop.f32.mrb[12].mxu0  ;;  %v369_v28 = vpop.f32.mrb[12].mxu1 }
 0x113   :  { %v484_v29 = vsel %vm418_vm11, %v285_v21, %v453_v25  ;;  %v500_v30 = vsel %vm434_vm12, %v365_v23, %v469_v26  ;;  %v290_v33 = vadd.f32 %v289_v27, %v935_v31  ;;  %v291_v34 = vpop.f32.mrb[13].mxu0  ;;  %v370_v35 = vadd.f32 %v369_v28, %v935_v31  ;;  %v371_v36 = vpop.f32.mrb[13].mxu1 }
 0x114   :  { %515 = vst [vmem:[%s1097_s3 + $0x28] sm:$0xff] %v484_v29  ;;  %531 = vst [vmem:[%s1097_s3 + $0xa8] sm:$0xff] %v500_v30 }
 0x115   :  { %vm419_vm13 = vcmp.ge.f32.partialorder %v290_v33, 0.0  ;;  %v454_v37 = vmul.f32 %v937_v32, %v290_v33  ;;  %vm435_vm14 = vcmp.ge.f32.partialorder %v370_v35, 0.0  ;;  %v470_v38 = vmul.f32 %v937_v32, %v370_v35 }
 0x116   :  { %v294_v39 = vpop.f32.mrb[14].mxu0  ;;  %v374_v40 = vpop.f32.mrb[14].mxu1 }
 0x117   :  { %v485_v41 = vsel %vm419_vm13, %v290_v33, %v454_v37  ;;  %v501_v42 = vsel %vm435_vm14, %v370_v35, %v470_v38  ;;  %v295_v43 = vadd.f32 %v294_v39, %v935_v31  ;;  %v296_v44 = vpop.f32.mrb[15].mxu0  ;;  %v375_v45 = vadd.f32 %v374_v40, %v935_v31  ;;  %v376_v46 = vpop.f32.mrb[15].mxu1 }
 0x118   :  { %516 = vst [vmem:[%s1097_s3 + $0x30] sm:$0xff] %v485_v41  ;;  %532 = vst [vmem:[%s1097_s3 + $0xb0] sm:$0xff] %v501_v42 }
 0x119   :  { %vm420_vm15 = vcmp.ge.f32.partialorder %v295_v43, 0.0  ;;  %v455_v47 = vmul.f32 %v937_v32, %v295_v43  ;;  %vm436_vm0 = vcmp.ge.f32.partialorder %v375_v45, 0.0  ;;  %v471_v48 = vmul.f32 %v937_v32, %v375_v45 }
 0x11a   :  { %v299_v49 = vpop.f32.mrb[16].mxu0  ;;  %v379_v50 = vpop.f32.mrb[16].mxu1 }
 0x11b   :  { %v486_v51 = vsel %vm420_vm15, %v295_v43, %v455_v47  ;;  %v502_v52 = vsel %vm436_vm0, %v375_v45, %v471_v48  ;;  %v300_v53 = vadd.f32 %v299_v49, %v935_v31  ;;  %v301_v54 = vpop.f32.mrb[17].mxu0  ;;  %v380_v55 = vadd.f32 %v379_v50, %v935_v31  ;;  %v381_v56 = vpop.f32.mrb[17].mxu1 }
 0x11c   :  { %517 = vst [vmem:[%s1097_s3 + $0x38] sm:$0xff] %v486_v51  ;;  %533 = vst [vmem:[%s1097_s3 + $0xb8] sm:$0xff] %v502_v52 }
 0x11d   :  { %vm421_vm1 = vcmp.ge.f32.partialorder %v300_v53, 0.0  ;;  %v456_v57 = vmul.f32 %v937_v32, %v300_v53  ;;  %vm437_vm2 = vcmp.ge.f32.partialorder %v380_v55, 0.0  ;;  %v472_v58 = vmul.f32 %v937_v32, %v380_v55 }
 0x11e   :  { %v304_v59 = vpop.f32.mrb[18].mxu0  ;;  %v384_v60 = vpop.f32.mrb[18].mxu1 }
 0x11f   :  { %v487_v61 = vsel %vm421_vm1, %v300_v53, %v456_v57  ;;  %v503_v62 = vsel %vm437_vm2, %v380_v55, %v472_v58  ;;  %v305_v63 = vadd.f32 %v304_v59, %v935_v31  ;;  %v306_v0 = vpop.f32.mrb[19].mxu0  ;;  %v385_v1 = vadd.f32 %v384_v60, %v935_v31  ;;  %v386_v2 = vpop.f32.mrb[19].mxu1 }
 0x120   :  { %518 = vst [vmem:[%s1097_s3 + $0x40] sm:$0xff] %v487_v61  ;;  %534 = vst [vmem:[%s1097_s3 + $0xc0] sm:$0xff] %v503_v62 }
 0x121   :  { %vm422_vm3 = vcmp.ge.f32.partialorder %v305_v63, 0.0  ;;  %v457_v3 = vmul.f32 %v937_v32, %v305_v63  ;;  %vm438_vm4 = vcmp.ge.f32.partialorder %v385_v1, 0.0  ;;  %v473_v4 = vmul.f32 %v937_v32, %v385_v1 }
 0x122   :  { %v309_v5 = vpop.f32.mrb[20].mxu0  ;;  %v389_v6 = vpop.f32.mrb[20].mxu1 }
 0x123   :  { %v488_v7 = vsel %vm422_vm3, %v305_v63, %v457_v3  ;;  %v504_v8 = vsel %vm438_vm4, %v385_v1, %v473_v4  ;;  %v310_v9 = vadd.f32 %v309_v5, %v935_v31  ;;  %v311_v10 = vpop.f32.mrb[21].mxu0  ;;  %v390_v11 = vadd.f32 %v389_v6, %v935_v31  ;;  %v391_v12 = vpop.f32.mrb[21].mxu1 }
 0x124   :  { %519 = vst [vmem:[%s1097_s3 + $0x48] sm:$0xff] %v488_v7  ;;  %535 = vst [vmem:[%s1097_s3 + $0xc8] sm:$0xff] %v504_v8 }
 0x125   :  { %vm423_vm5 = vcmp.ge.f32.partialorder %v310_v9, 0.0  ;;  %v458_v13 = vmul.f32 %v937_v32, %v310_v9  ;;  %vm439_vm6 = vcmp.ge.f32.partialorder %v390_v11, 0.0  ;;  %v474_v14 = vmul.f32 %v937_v32, %v390_v11 }
 0x126   :  { %v314_v15 = vpop.f32.mrb[22].mxu0  ;;  %v394_v16 = vpop.f32.mrb[22].mxu1 }
 0x127   :  { %v489_v17 = vsel %vm423_vm5, %v310_v9, %v458_v13  ;;  %v505_v18 = vsel %vm439_vm6, %v390_v11, %v474_v14  ;;  %v315_v19 = vadd.f32 %v314_v15, %v935_v31  ;;  %v316_v20 = vpop.f32.mrb[23].mxu0  ;;  %v395_v21 = vadd.f32 %v394_v16, %v935_v31  ;;  %v396_v22 = vpop.f32.mrb[23].mxu1 }
 0x128   :  { %520 = vst [vmem:[%s1097_s3 + $0x50] sm:$0xff] %v489_v17  ;;  %536 = vst [vmem:[%s1097_s3 + $0xd0] sm:$0xff] %v505_v18 }
 0x129   :  { %vm424_vm7 = vcmp.ge.f32.partialorder %v315_v19, 0.0  ;;  %v459_v23 = vmul.f32 %v937_v32, %v315_v19  ;;  %vm440_vm8 = vcmp.ge.f32.partialorder %v395_v21, 0.0  ;;  %v475_v24 = vmul.f32 %v937_v32, %v395_v21 }
 0x12a   :  { %v319_v25 = vpop.f32.mrb[24].mxu0  ;;  %v399_v26 = vpop.f32.mrb[24].mxu1 }
 0x12b   :  { %v490_v27 = vsel %vm424_vm7, %v315_v19, %v459_v23  ;;  %v506_v28 = vsel %vm440_vm8, %v395_v21, %v475_v24  ;;  %v320_v29 = vadd.f32 %v319_v25, %v935_v31  ;;  %v321_v30 = vpop.f32.mrb[25].mxu0  ;;  %v400_v33 = vadd.f32 %v399_v26, %v935_v31  ;;  %v401_v34 = vpop.f32.mrb[25].mxu1 }
 0x12c   :  { %521 = vst [vmem:[%s1097_s3 + $0x58] sm:$0xff] %v490_v27  ;;  %537 = vst [vmem:[%s1097_s3 + $0xd8] sm:$0xff] %v506_v28 }
 0x12d   :  { %vm425_vm9 = vcmp.ge.f32.partialorder %v320_v29, 0.0  ;;  %v460_v35 = vmul.f32 %v937_v32, %v320_v29  ;;  %vm441_vm10 = vcmp.ge.f32.partialorder %v400_v33, 0.0  ;;  %v476_v36 = vmul.f32 %v937_v32, %v400_v33 }
 0x12e   :  { %v324_v37 = vpop.f32.mrb[26].mxu0  ;;  %v404_v38 = vpop.f32.mrb[26].mxu1 }
 0x12f   :  { %v491_v39 = vsel %vm425_vm9, %v320_v29, %v460_v35  ;;  %v507_v40 = vsel %vm441_vm10, %v400_v33, %v476_v36  ;;  %v325_v41 = vadd.f32 %v324_v37, %v935_v31  ;;  %v326_v42 = vpop.f32.mrb[27].mxu0  ;;  %v405_v43 = vadd.f32 %v404_v38, %v935_v31  ;;  %v406_v44 = vpop.f32.mrb[27].mxu1 }
 0x130   :  { %522 = vst [vmem:[%s1097_s3 + $0x60] sm:$0xff] %v491_v39  ;;  %538 = vst [vmem:[%s1097_s3 + $0xe0] sm:$0xff] %v507_v40 }
 0x131   :  { %vm426_vm11 = vcmp.ge.f32.partialorder %v325_v41, 0.0  ;;  %v461_v45 = vmul.f32 %v937_v32, %v325_v41  ;;  %vm442_vm12 = vcmp.ge.f32.partialorder %v405_v43, 0.0  ;;  %v477_v46 = vmul.f32 %v937_v32, %v405_v43 }
 0x132   :  { %v329_v47 = vpop.f32.mrb[28].mxu0  ;;  %v409_v48 = vpop.f32.mrb[28].mxu1 }
 0x133   :  { %v492_v49 = vsel %vm426_vm11, %v325_v41, %v461_v45  ;;  %v508_v50 = vsel %vm442_vm12, %v405_v43, %v477_v46  ;;  %v330_v51 = vadd.f32 %v329_v47, %v935_v31  ;;  %v331_v52 = vpop.f32.mrb[29].mxu0  ;;  %v410_v53 = vadd.f32 %v409_v48, %v935_v31  ;;  %v411_v54 = vpop.f32.mrb[29].mxu1 }
 0x134   :  { %523 = vst [vmem:[%s1097_s3 + $0x68] sm:$0xff] %v492_v49  ;;  %539 = vst [vmem:[%s1097_s3 + $0xe8] sm:$0xff] %v508_v50 }
 0x135   :  { %vm427_vm13 = vcmp.ge.f32.partialorder %v330_v51, 0.0  ;;  %v462_v55 = vmul.f32 %v937_v32, %v330_v51  ;;  %vm443_vm14 = vcmp.ge.f32.partialorder %v410_v53, 0.0  ;;  %v478_v56 = vmul.f32 %v937_v32, %v410_v53 }
 0x136   :  { %v334_v57 = vpop.f32.mrb[30].mxu0 }
 0x137   :  { %v493_v58 = vsel %vm427_vm13, %v330_v51, %v462_v55  ;;  %v509_v59 = vsel %vm443_vm14, %v410_v53, %v478_v56  ;;  %v335_v60 = vadd.f32 %v334_v57, %v935_v31  ;;  %v336_v61 = vpop.f32.mrb[31].mxu0 }
 0x138   :  { %524 = vst [vmem:[%s1097_s3 + $0x70] sm:$0xff] %v493_v58  ;;  %540 = vst [vmem:[%s1097_s3 + $0xf0] sm:$0xff] %v509_v59 }
 0x139   :  { %vm428_vm15 = vcmp.ge.f32.partialorder %v335_v60, 0.0  ;;  %v463_v62 = vmul.f32 %v937_v32, %v335_v60 }
 0x13b   :  { %v494_v63 = vsel %vm428_vm15, %v335_v60, %v463_v62 }
 0x13c   :  { %525 = vst [vmem:[%s1097_s3 + $0x78] sm:$0xff] %v494_v63 }

// kernel: _lambda_.6
= control target key start
LH: loop header
LB: loop body
LE: loop exit
PB: predicated region body
PF: predicated region fallthrough
CT: control target
= control target key end

     0   :  { %v475_v3 = vmov 0.0|0.0   ;;  %vm476_vm0 = vmmov 0   ;;  %v477_v4 = vmov 0.0   ;;  %vm76_vm1 = vcmask 261120   ;;  %s723_s1 = inlined_call_operand.vmem [shape: f32[288,128], index: 1, kind: input, shape index: {}]   ;;  %s724_s0 = inlined_call_operand.vmem [shape: f32[56,288], index: 0, kind: input, shape index: {}]   ;;  %s725_s2 = inlined_call_operand.vmem [shape: f32[2,128], index: 2, kind: input, shape index: {}]   ;;  %s726_s3 = inlined_call_operand.vmem [shape: f32[56,128], index: 3, kind: output, shape index: {}]  }
   0x1   :  { %v52_v0 = vld [vmem:[%s723_s1 + $0x80] sm:$0xff]  ;;  %v53_v1 = vld [vmem:[%s723_s1 + $0x88] sm:$0xff]  ;;  %466 = vmatprep.subr.bf16.mxu1 %v475_v3  ;;  %413 = vmatprep.mubr.msk.f32.mxu1 %vm476_vm0, %v477_v4  ;;  %v54_v7 = vld [vmem:[%s723_s1 + $0x90] sm:$0xff] }
   0x2   :  { %v36_v2 = vld [vmem:[%s723_s1] sm:$0xff]  ;;  %v434_v5 = vpack.c.bf16 %v53_v1, %v52_v0  ;;  %v37_v6 = vld [vmem:[%s723_s1 + $0x8] sm:$0xff]  ;;  %v55_v8 = vld [vmem:[%s723_s1 + $0x98] sm:$0xff] }
   0x3   :  { %v436_v9 = vpack.c.bf16 %v37_v6, %v36_v2  ;;  %v438_v10 = vpack.c.bf16 %v55_v8, %v54_v7  ;;  %v38_v11 = vld [vmem:[%s723_s1 + $0x10] sm:$0xff]  ;;  %v39_v12 = vld [vmem:[%s723_s1 + $0x18] sm:$0xff]  ;;  %v56_v13 = vld [vmem:[%s723_s1 + $0xa0] sm:$0xff] }
   0x4   :  { %435 = vmatprep.subr.bf16.mxu0 %v434_v5  ;;  %v57_v14 = vld [vmem:[%s723_s1 + $0xa8] sm:$0xff]  ;;  %v440_v15 = vpack.c.bf16 %v39_v12, %v38_v11  ;;  %v40_v17 = vld [vmem:[%s723_s1 + $0x20] sm:$0xff]  ;;  %v58_v19 = vld [vmem:[%s723_s1 + $0xb0] sm:$0xff] }
   0x5   :  { %437 = vmatpush3.bf16.msra.mxu0 %v436_v9  ;;  %v442_v16 = vpack.c.bf16 %v57_v14, %v56_v13  ;;  %v41_v18 = vld [vmem:[%s723_s1 + $0x28] sm:$0xff]  ;;  %v59_v20 = vld [vmem:[%s723_s1 + $0xb8] sm:$0xff]  ;;  %v42_v23 = vld [vmem:[%s723_s1 + $0x30] sm:$0xff] }
   0x6   :  { %439 = vmatprep.subr.bf16.mxu0 %v438_v10  ;;  %v444_v21 = vpack.c.bf16 %v41_v18, %v40_v17  ;;  %v446_v22 = vpack.c.bf16 %v59_v20, %v58_v19  ;;  %v43_v24 = vld [vmem:[%s723_s1 + $0x38] sm:$0xff]  ;;  %v60_v25 = vld [vmem:[%s723_s1 + $0xc0] sm:$0xff]  ;;  %v61_v26 = vld [vmem:[%s723_s1 + $0xc8] sm:$0xff] }
   0x7   :  { %v68_v27 = vld [vmem:[%s723_s1 + $0x100] sm:$0xff]  ;;  %v69_v28 = vld [vmem:[%s723_s1 + $0x108] sm:$0xff]  ;;  %v448_v30 = vpack.c.bf16 %v43_v24, %v42_v23  ;;  %v70_v32 = vld [vmem:[%s723_s1 + $0x110] sm:$0xff]  ;;  %v450_v34 = vpack.c.bf16 %v61_v26, %v60_v25 }
   0x8   :  { %v16_v29 = vld [vmem:[%s724_s0 + $0x8] sm:$0xff]  ;;  %v467_v31 = vpack.c.bf16 %v69_v28, %v68_v27  ;;  %v71_v33 = vld [vmem:[%s723_s1 + $0x118] sm:$0xff]  ;;  %v44_v35 = vld [vmem:[%s723_s1 + $0x40] sm:$0xff] }
   0x9   :  { %441 = vmatpush3.bf16.msra.mxu0 %v440_v15  ;;  %162 = vmatprep.mubr.f32.mxu0 %v16_v29  ;;  %v45_v36 = vld [vmem:[%s723_s1 + $0x48] sm:$0xff]  ;;  %v62_v37 = vld [vmem:[%s723_s1 + $0xd0] sm:$0xff]  ;;  %v63_v38 = vld [vmem:[%s723_s1 + $0xd8] sm:$0xff]  ;;  %v470_v39 = vpack.c.bf16 %v71_v33, %v70_v32  ;;  %v72_v15 = vlaneseq }
   0xa   :  { %443 = vmatprep.subr.bf16.mxu0 %v442_v16  ;;  %468 = vmatpush3.bf16.msra.mxu1 %v467_v31  ;;  %v452_v40 = vpack.c.bf16 %v45_v36, %v44_v35  ;;  %v454_v41 = vpack.c.bf16 %v63_v38, %v62_v37  ;;  %v46_v42 = vld [vmem:[%s723_s1 + $0x50] sm:$0xff]  ;;  %v47_v43 = vld [vmem:[%s723_s1 + $0x58] sm:$0xff]  ;;  %v64_v44 = vld [vmem:[%s723_s1 + $0xe0] sm:$0xff] }
   0xb   :  { %469 = vmatprep.subr.bf16.mxu1 %v475_v3  ;;  %v65_v45 = vld [vmem:[%s723_s1 + $0xe8] sm:$0xff]  ;;  %v17_v46 = vld [vmem:[%s724_s0 + $0x10] sm:$0xff]  ;;  %v456_v47 = vpack.c.bf16 %v47_v43, %v46_v42  ;;  %v48_v49 = vld [vmem:[%s723_s1 + $0x60] sm:$0xff]  ;;  %v73_v18 = vshrl.u32 %v72_v15, 7 }
   0xc   :  { %v458_v48 = vpack.c.bf16 %v65_v45, %v64_v44  ;;  %v49_v50 = vld [vmem:[%s723_s1 + $0x68] sm:$0xff]  ;;  %v66_v51 = vld [vmem:[%s723_s1 + $0xf0] sm:$0xff]  ;;  %v67_v52 = vld [vmem:[%s723_s1 + $0xf8] sm:$0xff] }
   0xd   :  { %445 = vmatpush3.bf16.msra.mxu0 %v444_v21  ;;  %v20_v53 = vld [vmem:[%s724_s0 + $0x28] sm:$0xff]  ;;  %v460_v54 = vpack.c.bf16 %v49_v50, %v48_v49  ;;  %v462_v55 = vpack.c.bf16 %v67_v52, %v66_v51  ;;  %v50_v56 = vld [vmem:[%s723_s1 + $0x70] sm:$0xff]  ;;  %v51_v57 = vld [vmem:[%s723_s1 + $0x78] sm:$0xff]  ;;  %v74_v21 = vsub.s32 0, %v73_v18  ;;  %v307_v27 = vsub.s32 1, %v73_v18 }
   0xe   :  { %447 = vmatprep.subr.bf16.mxu0 %v446_v22  ;;  %471 = vmatpush3.bf16.msra.mxu1 %v470_v39  ;;  %v23_v58 = vld [vmem:[%s724_s0 + $0x40] sm:$0xff]  ;;  %v464_v59 = vpack.c.bf16 %v51_v57, %v50_v56  ;;  %v26_v60 = vld [vmem:[%s724_s0 + $0x58] sm:$0xff]  ;;  %v29_v63 = vld [vmem:[%s724_s0 + $0x70] sm:$0xff] }
   0xf   :  { %v15_v61 = vld [vmem:[%s724_s0] sm:$0xff]  ;;  %v18_v0 = vld [vmem:[%s724_s0 + $0x18] sm:$0xff]  ;;  %v32_v2 = vld [vmem:[%s724_s0 + $0x88] sm:$0xff] }
  0x10   :  { %v19_v62 = vld [vmem:[%s724_s0 + $0x20] sm:$0xff]  ;;  %v22_v1 = vld [vmem:[%s724_s0 + $0x38] sm:$0xff]  ;;  %v21_v3 = vld [vmem:[%s724_s0 + $0x30] sm:$0xff] }
  0x11   :  { %449 = vmatpush3.bf16.msra.mxu0 %v448_v30  ;;  %414 = vmatmul.mubr.msk.f32.vlgmr.msra.gmra.mrb[0].mxu1 %vm76_vm1, %v17_v46  ;;  %v25_v5 = vld [vmem:[%s724_s0 + $0x50] sm:$0xff]  ;;  %v35_v6 = vld [vmem:[%s724_s0 + $0xa0] sm:$0xff]  ;;  %v24_v7 = vld [vmem:[%s724_s0 + $0x48] sm:$0xff] }
  0x12   :  { %451 = vmatprep.subr.bf16.mxu0 %v450_v34  ;;  %416 = vmatprep.mubr.msk.f32.mxu1 %vm476_vm0, %v477_v4  ;;  %v28_v8 = vld [vmem:[%s724_s0 + $0x68] sm:$0xff]  ;;  %v31_v9 = vld [vmem:[%s724_s0 + $0x80] sm:$0xff]  ;;  %v30_v10 = vld [vmem:[%s724_s0 + $0x78] sm:$0xff] }
  0x13   :  { %v34_v11 = vld [vmem:[%s724_s0 + $0x98] sm:$0xff]  ;;  %v33_v12 = vld [vmem:[%s724_s0 + $0x90] sm:$0xff]  ;;  %v14_v22 = vld [vmem:[%s725_s2] sm:$0x3] }
  0x14   :  { %v693_v26 = vrot.slane %v14_v22, %v74_v21  ;;  %v308_v34 = vrot.slane %v14_v22, %v307_v27 }
  0x15   :  { %453 = vmatpush3.bf16.msra.mxu0 %v452_v40  ;;  %417 = vmatmul.mubr.msk.f32.gmra.mrb[2].mxu1 %vm76_vm1, %v20_v53 }
  0x16   :  { %455 = vmatprep.subr.bf16.mxu0 %v454_v41  ;;  %419 = vmatprep.mubr.msk.f32.mxu1 %vm476_vm0, %v477_v4 }
  0x19   :  { %457 = vmatpush3.bf16.msra.mxu0 %v456_v47  ;;  %420 = vmatmul.mubr.msk.f32.gmra.mrb[4].mxu1 %vm76_vm1, %v23_v58 }
  0x1a   :  { %459 = vmatprep.subr.bf16.mxu0 %v458_v48  ;;  %422 = vmatprep.mubr.msk.f32.mxu1 %vm476_vm0, %v477_v4 }
  0x1d   :  { %461 = vmatpush3.bf16.msra.mxu0 %v460_v54  ;;  %423 = vmatmul.mubr.msk.f32.gmra.mrb[6].mxu1 %vm76_vm1, %v26_v60 }
  0x1e   :  { %463 = vmatprep.subr.bf16.mxu0 %v462_v55  ;;  %425 = vmatprep.mubr.msk.f32.mxu1 %vm476_vm0, %v477_v4 }
  0x21   :  { %465 = vmatpush3.bf16.msra.mxu0 %v464_v59  ;;  %426 = vmatmul.mubr.msk.f32.gmra.mrb[8].mxu1 %vm76_vm1, %v29_v63 }
  0x22   :  { %428 = vmatprep.mubr.msk.f32.mxu1 %vm476_vm0, %v477_v4 }
  0x24   :  { %163 = vmatmul.mubr.f32.vlgmr.msra.gmra.mrb[0].mxu0 %v15_v61 }
  0x25   :  { %167 = vmatprep.mubr.f32.mxu0 %v19_v62  ;;  %429 = vmatmul.mubr.msk.f32.gmra.mrb[10].mxu1 %vm76_vm1, %v32_v2 }
  0x26   :  { %431 = vmatprep.mubr.msk.f32.mxu1 %vm476_vm0, %v477_v4  ;;  %v27_v4 = vld [vmem:[%s724_s0 + $0x60] sm:$0xff] }
  0x28   :  { %168 = vmatmul.mubr.f32.gmra.mrb[2].mxu0 %v18_v0 }
  0x29   :  { %172 = vmatprep.mubr.f32.mxu0 %v22_v1  ;;  %432 = vmatmul.mubr.msk.f32.gmra.mrb[12].mxu1 %vm76_vm1, %v35_v6 }
  0x2c   :  { %173 = vmatmul.mubr.f32.gmra.mrb[4].mxu0 %v21_v3 }
  0x2d   :  { %177 = vmatprep.mubr.f32.mxu0 %v25_v5 }
  0x30   :  { %178 = vmatmul.mubr.f32.gmra.mrb[6].mxu0 %v24_v7 }
  0x31   :  { %182 = vmatprep.mubr.f32.mxu0 %v28_v8 }
  0x34   :  { %183 = vmatmul.mubr.f32.gmra.mrb[8].mxu0 %v27_v4 }
  0x35   :  { %187 = vmatprep.mubr.f32.mxu0 %v31_v9 }
  0x38   :  { %188 = vmatmul.mubr.f32.gmra.mrb[10].mxu0 %v30_v10 }
  0x39   :  { %192 = vmatprep.mubr.f32.mxu0 %v34_v11 }
  0x3c   :  { %193 = vmatmul.mubr.f32.gmra.mrb[12].mxu0 %v33_v12 }
  0xe4   :  { %v264_v13 = vpop.f32.mrb[0].mxu1 }
  0xe5   :  { %v415_v14 = vpop.f32.mrb[1].mxu1 }
  0xe8   :  { %v269_v16 = vpop.f32.mrb[2].mxu1 }
  0xe9   :  { %v418_v17 = vpop.f32.mrb[3].mxu1 }
  0xec   :  { %v274_v19 = vpop.f32.mrb[4].mxu1 }
  0xed   :  { %v421_v20 = vpop.f32.mrb[5].mxu1 }
  0xf0   :  { %v279_v23 = vpop.f32.mrb[6].mxu1 }
  0xf1   :  { %v424_v24 = vpop.f32.mrb[7].mxu1 }
  0xf4   :  { %v284_v30 = vpop.f32.mrb[8].mxu1 }
  0xf5   :  { %v427_v31 = vpop.f32.mrb[9].mxu1 }
  0xf7   :  { %v373_v25 = vpop.f32.mrb[0].mxu0 }
  0xf8   :  { %v374_v28 = vpop.f32.mrb[1].mxu0  ;;  %v289_v38 = vpop.f32.mrb[10].mxu1 }
  0xf9   :  { %v375_v29 = vadd.f32 %v374_v28, %v373_v25  ;;  %v430_v39 = vpop.f32.mrb[11].mxu1 }
  0xfb   :  { %v376_v32 = vpop.f32.mrb[2].mxu0  ;;  %v165_v33 = vadd.f32 %v375_v29, %v693_v26 }
  0xfc   :  { %v377_v35 = vpop.f32.mrb[3].mxu0  ;;  %v294_v47 = vpop.f32.mrb[12].mxu1 }
  0xfd   :  { %v265_v36 = vadd.f32 %v264_v13, %v165_v33  ;;  %v378_v37 = vadd.f32 %v377_v35, %v376_v32  ;;  %v433_v48 = vpop.f32.mrb[13].mxu1 }
  0xff   :  { %vm298_vm2 = vcmp.ge.f32.partialorder %v265_v36, 0.0  ;;  %v309_v40 = vmul.f32 %v308_v34, %v265_v36  ;;  %v379_v41 = vpop.f32.mrb[4].mxu0  ;;  %v170_v42 = vadd.f32 %v378_v37, %v693_v26 }
 0x100   :  { %v380_v43 = vpop.f32.mrb[5].mxu0 }
 0x101   :  { %v316_v44 = vsel %vm298_vm2, %v265_v36, %v309_v40  ;;  %v270_v45 = vadd.f32 %v269_v16, %v170_v42  ;;  %v381_v46 = vadd.f32 %v380_v43, %v379_v41 }
 0x102   :  { %323 = vst [vmem:[%s726_s3] sm:$0xff] %v316_v44 }
 0x103   :  { %vm299_vm3 = vcmp.ge.f32.partialorder %v270_v45, 0.0  ;;  %v310_v49 = vmul.f32 %v308_v34, %v270_v45  ;;  %v382_v50 = vpop.f32.mrb[6].mxu0  ;;  %v175_v51 = vadd.f32 %v381_v46, %v693_v26 }
 0x104   :  { %v383_v52 = vpop.f32.mrb[7].mxu0 }
 0x105   :  { %v317_v53 = vsel %vm299_vm3, %v270_v45, %v310_v49  ;;  %v275_v54 = vadd.f32 %v274_v19, %v175_v51  ;;  %v384_v55 = vadd.f32 %v383_v52, %v382_v50 }
 0x106   :  { %324 = vst [vmem:[%s726_s3 + $0x8] sm:$0xff] %v317_v53 }
 0x107   :  { %vm300_vm4 = vcmp.ge.f32.partialorder %v275_v54, 0.0  ;;  %v311_v56 = vmul.f32 %v308_v34, %v275_v54  ;;  %v385_v57 = vpop.f32.mrb[8].mxu0  ;;  %v180_v58 = vadd.f32 %v384_v55, %v693_v26 }
 0x108   :  { %v386_v59 = vpop.f32.mrb[9].mxu0 }
 0x109   :  { %v318_v60 = vsel %vm300_vm4, %v275_v54, %v311_v56  ;;  %v280_v61 = vadd.f32 %v279_v23, %v180_v58  ;;  %v387_v62 = vadd.f32 %v386_v59, %v385_v57 }
 0x10a   :  { %325 = vst [vmem:[%s726_s3 + $0x10] sm:$0xff] %v318_v60 }
 0x10b   :  { %vm301_vm5 = vcmp.ge.f32.partialorder %v280_v61, 0.0  ;;  %v312_v63 = vmul.f32 %v308_v34, %v280_v61  ;;  %v388_v0 = vpop.f32.mrb[10].mxu0  ;;  %v185_v1 = vadd.f32 %v387_v62, %v693_v26 }
 0x10c   :  { %v389_v2 = vpop.f32.mrb[11].mxu0 }
 0x10d   :  { %v319_v3 = vsel %vm301_vm5, %v280_v61, %v312_v63  ;;  %v285_v5 = vadd.f32 %v284_v30, %v185_v1  ;;  %v390_v6 = vadd.f32 %v389_v2, %v388_v0 }
 0x10e   :  { %326 = vst [vmem:[%s726_s3 + $0x18] sm:$0xff] %v319_v3 }
 0x10f   :  { %vm302_vm6 = vcmp.ge.f32.partialorder %v285_v5, 0.0  ;;  %v313_v7 = vmul.f32 %v308_v34, %v285_v5  ;;  %v391_v8 = vpop.f32.mrb[12].mxu0  ;;  %v190_v4 = vadd.f32 %v390_v6, %v693_v26 }
 0x110   :  { %v392_v9 = vpop.f32.mrb[13].mxu0 }
 0x111   :  { %v320_v10 = vsel %vm302_vm6, %v285_v5, %v313_v7  ;;  %v290_v11 = vadd.f32 %v289_v38, %v190_v4  ;;  %v393_v12 = vadd.f32 %v392_v9, %v391_v8 }
 0x112   :  { %327 = vst [vmem:[%s726_s3 + $0x20] sm:$0xff] %v320_v10 }
 0x113   :  { %vm303_vm7 = vcmp.ge.f32.partialorder %v290_v11, 0.0  ;;  %v314_v13 = vmul.f32 %v308_v34, %v290_v11  ;;  %v195_v14 = vadd.f32 %v393_v12, %v693_v26 }
 0x115   :  { %v321_v15 = vsel %vm303_vm7, %v290_v11, %v314_v13  ;;  %v295_v16 = vadd.f32 %v294_v47, %v195_v14 }
 0x116   :  { %328 = vst [vmem:[%s726_s3 + $0x28] sm:$0xff] %v321_v15 }
 0x117   :  { %vm304_vm8 = vcmp.ge.f32.partialorder %v295_v16, 0.0  ;;  %v315_v17 = vmul.f32 %v308_v34, %v295_v16 }
 0x119   :  { %v322_v18 = vsel %vm304_vm8, %v295_v16, %v315_v17 }
 0x11a   :  { %329 = vst [vmem:[%s726_s3 + $0x30] sm:$0xff] %v322_v18 }

// kernel: _lambda_.7
= control target key start
LH: loop header
LB: loop body
LE: loop exit
PB: predicated region body
PF: predicated region fallthrough
CT: control target
= control target key end

     0   :  { %vm501_vm0 = vmmov 0   ;;  %vm96_vm1 = vcmask 523264   ;;  %s760_s1 = inlined_call_operand.vmem [shape: f32[576,128], index: 1, kind: input, shape index: {}]   ;;  %s761_s0 = inlined_call_operand.vmem [shape: f32[8,576], index: 0, kind: input, shape index: {}]   ;;  %s762_s2 = inlined_call_operand.vmem [shape: f32[2,128], index: 2, kind: input, shape index: {}]   ;;  %s763_s3 = inlined_call_operand.vmem [shape: f32[8,128], index: 3, kind: output, shape index: {}]  }
   0x1   :  { %v36_v0 = vld [vmem:[%s760_s1 + $0x80] sm:$0xff]  ;;  %v37_v1 = vld [vmem:[%s760_s1 + $0x88] sm:$0xff]  ;;  %v38_v11 = vld [vmem:[%s760_s1 + $0x90] sm:$0xff] }
   0x2   :  { %v20_v2 = vld [vmem:[%s760_s1] sm:$0xff]  ;;  %v421_v3 = vpack.c.bf16 %v37_v1, %v36_v0  ;;  %v21_v4 = vld [vmem:[%s760_s1 + $0x8] sm:$0xff]  ;;  %v39_v13 = vld [vmem:[%s760_s1 + $0x98] sm:$0xff] }
   0x3   :  { %v68_v5 = vld [vmem:[%s760_s1 + $0x180] sm:$0xff]  ;;  %v69_v6 = vld [vmem:[%s760_s1 + $0x188] sm:$0xff]  ;;  %v423_v7 = vpack.c.bf16 %v21_v4, %v20_v2  ;;  %v22_v14 = vld [vmem:[%s760_s1 + $0x10] sm:$0xff]  ;;  %v425_v16 = vpack.c.bf16 %v39_v13, %v38_v11 }
   0x4   :  { %v453_v8 = vpack.c.bf16 %v69_v6, %v68_v5  ;;  %v52_v9 = vld [vmem:[%s760_s1 + $0x100] sm:$0xff]  ;;  %v53_v10 = vld [vmem:[%s760_s1 + $0x108] sm:$0xff]  ;;  %422 = vmatprep.subr.bf16.mxu0 %v421_v3  ;;  %v23_v15 = vld [vmem:[%s760_s1 + $0x18] sm:$0xff] }
   0x5   :  { %v455_v12 = vpack.c.bf16 %v53_v10, %v52_v9  ;;  %424 = vmatpush3.bf16.msra.mxu0 %v423_v7  ;;  %v427_v17 = vpack.c.bf16 %v23_v15, %v22_v14  ;;  %v70_v18 = vld [vmem:[%s760_s1 + $0x190] sm:$0xff]  ;;  %v71_v19 = vld [vmem:[%s760_s1 + $0x198] sm:$0xff]  ;;  %v40_v23 = vld [vmem:[%s760_s1 + $0xa0] sm:$0xff] }
   0x6   :  { %454 = vmatprep.subr.bf16.mxu1 %v453_v8  ;;  %v54_v20 = vld [vmem:[%s760_s1 + $0x110] sm:$0xff]  ;;  %v457_v21 = vpack.c.bf16 %v71_v19, %v70_v18  ;;  %v55_v22 = vld [vmem:[%s760_s1 + $0x118] sm:$0xff]  ;;  %v41_v24 = vld [vmem:[%s760_s1 + $0xa8] sm:$0xff]  ;;  %426 = vmatprep.subr.bf16.mxu0 %v425_v16 }
   0x7   :  { %456 = vmatpush3.bf16.msra.mxu1 %v455_v12  ;;  %v459_v25 = vpack.c.bf16 %v55_v22, %v54_v20  ;;  %v429_v26 = vpack.c.bf16 %v41_v24, %v40_v23  ;;  %v24_v27 = vld [vmem:[%s760_s1 + $0x20] sm:$0xff]  ;;  %v25_v28 = vld [vmem:[%s760_s1 + $0x28] sm:$0xff]  ;;  %v42_v35 = vld [vmem:[%s760_s1 + $0xb0] sm:$0xff] }
   0x8   :  { %v72_v29 = vld [vmem:[%s760_s1 + $0x1a0] sm:$0xff]  ;;  %458 = vmatprep.subr.bf16.mxu1 %v457_v21  ;;  %v73_v30 = vld [vmem:[%s760_s1 + $0x1a8] sm:$0xff]  ;;  %v431_v33 = vpack.c.bf16 %v25_v28, %v24_v27  ;;  %v43_v36 = vld [vmem:[%s760_s1 + $0xb8] sm:$0xff] }
   0x9   :  { %v56_v31 = vld [vmem:[%s760_s1 + $0x120] sm:$0xff]  ;;  %v57_v32 = vld [vmem:[%s760_s1 + $0x128] sm:$0xff]  ;;  %428 = vmatpush3.bf16.msra.mxu0 %v427_v17  ;;  %v461_v34 = vpack.c.bf16 %v73_v30, %v72_v29  ;;  %v26_v37 = vld [vmem:[%s760_s1 + $0x30] sm:$0xff]  ;;  %v433_v39 = vpack.c.bf16 %v43_v36, %v42_v35 }
   0xa   :  { %430 = vmatprep.subr.bf16.mxu0 %v429_v26  ;;  %v463_v38 = vpack.c.bf16 %v57_v32, %v56_v31  ;;  %v27_v40 = vld [vmem:[%s760_s1 + $0x38] sm:$0xff]  ;;  %v74_v41 = vld [vmem:[%s760_s1 + $0x1b0] sm:$0xff]  ;;  %v44_v46 = vld [vmem:[%s760_s1 + $0xc0] sm:$0xff] }
   0xb   :  { %460 = vmatpush3.bf16.msra.mxu1 %v459_v25  ;;  %v75_v42 = vld [vmem:[%s760_s1 + $0x1b8] sm:$0xff]  ;;  %v58_v44 = vld [vmem:[%s760_s1 + $0x130] sm:$0xff]  ;;  %v45_v47 = vld [vmem:[%s760_s1 + $0xc8] sm:$0xff]  ;;  %v435_v48 = vpack.c.bf16 %v27_v40, %v26_v37 }
   0xc   :  { %462 = vmatprep.subr.bf16.mxu1 %v461_v34  ;;  %v465_v43 = vpack.c.bf16 %v75_v42, %v74_v41  ;;  %v59_v45 = vld [vmem:[%s760_s1 + $0x138] sm:$0xff]  ;;  %v76_v49 = vld [vmem:[%s760_s1 + $0x1c0] sm:$0xff]  ;;  %v77_v50 = vld [vmem:[%s760_s1 + $0x1c8] sm:$0xff]  ;;  %v437_v52 = vpack.c.bf16 %v45_v47, %v44_v46 }
   0xd   :  { %432 = vmatpush3.bf16.msra.mxu0 %v431_v33  ;;  %v467_v51 = vpack.c.bf16 %v59_v45, %v58_v44  ;;  %v28_v53 = vld [vmem:[%s760_s1 + $0x40] sm:$0xff]  ;;  %v29_v54 = vld [vmem:[%s760_s1 + $0x48] sm:$0xff]  ;;  %v469_v56 = vpack.c.bf16 %v77_v50, %v76_v49  ;;  %v46_v58 = vld [vmem:[%s760_s1 + $0xd0] sm:$0xff]  ;;  %v502_v45 = vmov 0.0  }
   0xe   :  { %434 = vmatprep.subr.bf16.mxu0 %v433_v39  ;;  %v60_v55 = vld [vmem:[%s760_s1 + $0x140] sm:$0xff]  ;;  %v61_v57 = vld [vmem:[%s760_s1 + $0x148] sm:$0xff]  ;;  %v47_v59 = vld [vmem:[%s760_s1 + $0xd8] sm:$0xff]  ;;  %v439_v62 = vpack.c.bf16 %v29_v54, %v28_v53 }
   0xf   :  { %464 = vmatpush3.bf16.msra.mxu1 %v463_v38  ;;  %v78_v60 = vld [vmem:[%s760_s1 + $0x1d0] sm:$0xff]  ;;  %v79_v61 = vld [vmem:[%s760_s1 + $0x1d8] sm:$0xff]  ;;  %v471_v63 = vpack.c.bf16 %v61_v57, %v60_v55  ;;  %v441_v0 = vpack.c.bf16 %v47_v59, %v46_v58  ;;  %v48_v6 = vld [vmem:[%s760_s1 + $0xe0] sm:$0xff]  ;;  %v500_v38 = vmov 0.0|0.0  }
  0x10   :  { %466 = vmatprep.subr.bf16.mxu1 %v465_v43  ;;  %v30_v1 = vld [vmem:[%s760_s1 + $0x50] sm:$0xff]  ;;  %v31_v2 = vld [vmem:[%s760_s1 + $0x58] sm:$0xff]  ;;  %v473_v4 = vpack.c.bf16 %v79_v61, %v78_v60  ;;  %v49_v7 = vld [vmem:[%s760_s1 + $0xe8] sm:$0xff] }
  0x11   :  { %436 = vmatpush3.bf16.msra.mxu0 %v435_v48  ;;  %v62_v3 = vld [vmem:[%s760_s1 + $0x150] sm:$0xff]  ;;  %v63_v5 = vld [vmem:[%s760_s1 + $0x158] sm:$0xff]  ;;  %v80_v8 = vld [vmem:[%s760_s1 + $0x1e0] sm:$0xff]  ;;  %v443_v10 = vpack.c.bf16 %v31_v2, %v30_v1  ;;  %v445_v14 = vpack.c.bf16 %v49_v7, %v48_v6 }
  0x12   :  { %438 = vmatprep.subr.bf16.mxu0 %v437_v52  ;;  %v81_v9 = vld [vmem:[%s760_s1 + $0x1e8] sm:$0xff]  ;;  %v32_v11 = vld [vmem:[%s760_s1 + $0x60] sm:$0xff]  ;;  %v475_v13 = vpack.c.bf16 %v63_v5, %v62_v3  ;;  %v50_v19 = vld [vmem:[%s760_s1 + $0xf0] sm:$0xff] }
  0x13   :  { %468 = vmatpush3.bf16.msra.mxu1 %v467_v51  ;;  %v16_v12 = vld [vmem:[%s761_s0 + $0x8] sm:$0xff]  ;;  %v64_v16 = vld [vmem:[%s760_s1 + $0x160] sm:$0xff]  ;;  %v477_v18 = vpack.c.bf16 %v81_v9, %v80_v8  ;;  %v51_v20 = vld [vmem:[%s760_s1 + $0xf8] sm:$0xff]  ;;  %v92_v51 = vlaneseq }
  0x14   :  { %470 = vmatprep.subr.bf16.mxu1 %v469_v56  ;;  %v33_v15 = vld [vmem:[%s760_s1 + $0x68] sm:$0xff]  ;;  %164 = vmatprep.mubr.f32.mxu0 %v16_v12  ;;  %v18_v21 = vld [vmem:[%s761_s0 + $0x18] sm:$0xff]  ;;  %v82_v22 = vld [vmem:[%s760_s1 + $0x1f0] sm:$0xff]  ;;  %v449_v26 = vpack.c.bf16 %v51_v20, %v50_v19 }
  0x15   :  { %440 = vmatpush3.bf16.msra.mxu0 %v439_v62  ;;  %v65_v17 = vld [vmem:[%s760_s1 + $0x168] sm:$0xff]  ;;  %v83_v23 = vld [vmem:[%s760_s1 + $0x1f8] sm:$0xff]  ;;  %234 = vmatprep.mubr.f32.mxu1 %v18_v21  ;;  %v447_v24 = vpack.c.bf16 %v33_v15, %v32_v11  ;;  %v34_v27 = vld [vmem:[%s760_s1 + $0x70] sm:$0xff]  ;;  %v93_v52 = vshrl.u32 %v92_v51, 7 }
  0x16   :  { %442 = vmatprep.subr.bf16.mxu0 %v441_v0  ;;  %v479_v25 = vpack.c.bf16 %v65_v17, %v64_v16  ;;  %v35_v28 = vld [vmem:[%s760_s1 + $0x78] sm:$0xff]  ;;  %v481_v29 = vpack.c.bf16 %v83_v23, %v82_v22  ;;  %v66_v30 = vld [vmem:[%s760_s1 + $0x170] sm:$0xff]  ;;  %v84_v34 = vld [vmem:[%s760_s1 + $0x200] sm:$0xff] }
  0x17   :  { %472 = vmatpush3.bf16.msra.mxu1 %v471_v63  ;;  %v67_v31 = vld [vmem:[%s760_s1 + $0x178] sm:$0xff]  ;;  %v451_v32 = vpack.c.bf16 %v35_v28, %v34_v27  ;;  %v85_v35 = vld [vmem:[%s760_s1 + $0x208] sm:$0xff]  ;;  %v15_v36 = vld [vmem:[%s761_s0] sm:$0xff]  ;;  %v94_v53 = vsub.s32 0, %v93_v52  ;;  %v313_v0 = vsub.s32 1, %v93_v52 }
  0x18   :  { %474 = vmatprep.subr.bf16.mxu1 %v473_v4  ;;  %v483_v33 = vpack.c.bf16 %v67_v31, %v66_v30  ;;  %v486_v37 = vpack.c.bf16 %v85_v35, %v84_v34  ;;  %v17_v39 = vld [vmem:[%s761_s0 + $0x10] sm:$0xff]  ;;  %v87_v41 = vld [vmem:[%s760_s1 + $0x218] sm:$0xff]  ;;  %v88_v43 = vld [vmem:[%s760_s1 + $0x220] sm:$0xff] }
  0x19   :  { %444 = vmatpush3.bf16.msra.mxu0 %v443_v10  ;;  %v86_v40 = vld [vmem:[%s760_s1 + $0x210] sm:$0xff]  ;;  %v89_v44 = vld [vmem:[%s760_s1 + $0x228] sm:$0xff]  ;;  %v91_v48 = vld [vmem:[%s760_s1 + $0x238] sm:$0xff] }
  0x1a   :  { %446 = vmatprep.subr.bf16.mxu0 %v445_v14  ;;  %v489_v42 = vpack.c.bf16 %v87_v41, %v86_v40  ;;  %v492_v46 = vpack.c.bf16 %v89_v44, %v88_v43  ;;  %v90_v47 = vld [vmem:[%s760_s1 + $0x230] sm:$0xff]  ;;  %v19_v50 = vld [vmem:[%s761_s0 + $0x20] sm:$0xff] }
  0x1b   :  { %476 = vmatpush3.bf16.msra.mxu1 %v475_v13  ;;  %v495_v49 = vpack.c.bf16 %v91_v48, %v90_v47  ;;  %v14_v54 = vld [vmem:[%s762_s2] sm:$0x3] }
  0x1c   :  { %478 = vmatprep.subr.bf16.mxu1 %v477_v18  ;;  %v95_v56 = vrot.slane %v14_v54, %v94_v53  ;;  %v314_v1 = vrot.slane %v14_v54, %v313_v0 }
  0x1d   :  { %448 = vmatpush3.bf16.msra.mxu0 %v447_v24 }
  0x1e   :  { %450 = vmatprep.subr.bf16.mxu0 %v449_v26 }
  0x1f   :  { %480 = vmatpush3.bf16.msra.mxu1 %v479_v25 }
  0x20   :  { %482 = vmatprep.subr.bf16.mxu1 %v481_v29 }
  0x21   :  { %452 = vmatpush3.bf16.msra.mxu0 %v451_v32 }
  0x22   :  { %485 = vmatprep.subr.bf16.mxu0 %v500_v38 }
  0x23   :  { %484 = vmatpush3.bf16.msra.mxu1 %v483_v33 }
  0x24   :  { %165 = vmatmul.mubr.f32.vlgmr.msra.gmra.mrb[0].mxu0 %v15_v36 }
  0x25   :  { %487 = vmatpush3.bf16.msra.mxu0 %v486_v37  ;;  %418 = vmatprep.mubr.msk.f32.mxu0 %vm501_vm0, %v502_v45 }
  0x26   :  { %235 = vmatmul.mubr.f32.vlgmr.msra.gmra.mrb[0].mxu1 %v17_v39  ;;  %488 = vmatprep.subr.bf16.mxu0 %v500_v38 }
  0x29   :  { %490 = vmatpush3.bf16.msra.mxu0 %v489_v42 }
  0x2a   :  { %491 = vmatprep.subr.bf16.mxu0 %v500_v38 }
  0x2d   :  { %493 = vmatpush3.bf16.msra.mxu0 %v492_v46 }
  0x2e   :  { %494 = vmatprep.subr.bf16.mxu0 %v500_v38 }
  0x31   :  { %496 = vmatpush3.bf16.msra.mxu0 %v495_v49 }
  0x34   :  { %419 = vmatmul.mubr.msk.f32.vlgmr.msra.gmra.mrb[2].mxu0 %vm96_vm1, %v19_v50 }
  0xf7   :  { %v355_v55 = vpop.f32.mrb[0].mxu0 }
  0xf8   :  { %v356_v57 = vpop.f32.mrb[1].mxu0 }
  0xf9   :  { %v390_v58 = vpop.f32.mrb[0].mxu1  ;;  %v357_v59 = vadd.f32 %v356_v57, %v355_v55 }
  0xfa   :  { %v391_v60 = vpop.f32.mrb[1].mxu1 }
  0xfb   :  { %v392_v61 = vadd.f32 %v391_v60, %v390_v58  ;;  %v167_v62 = vadd.f32 %v357_v59, %v95_v56 }
  0xfd   :  { %v237_v63 = vadd.f32 %v392_v61, %v167_v62 }
 0x107   :  { %v306_v2 = vpop.f32.mrb[2].mxu0 }
 0x108   :  { %v307_v3 = vadd.f32 %v306_v2, %v237_v63  ;;  %v420_v4 = vpop.f32.mrb[3].mxu0 }
 0x10a   :  { %vm310_vm2 = vcmp.ge.f32.partialorder %v307_v3, 0.0  ;;  %v315_v5 = vmul.f32 %v314_v1, %v307_v3 }
 0x10c   :  { %v316_v6 = vsel %vm310_vm2, %v307_v3, %v315_v5 }
 0x10d   :  { %317 = vst [vmem:[%s763_s3] sm:$0xff] %v316_v6 }

</bundles_post_ra>
